<compile_context>
chip_gen: v5e
topology: v5e:2x2
jax: 0.10.0
libtpu: 0.0.40
codegen_flags: <defaults>
</compile_context>

<pallas_src>
import numpy as np
import jax
import jax.numpy as jnp
from jax.experimental import pallas as pl
from jax.experimental.pallas import tpu as pltpu

T_IN = 8            # input sequence length (small synthetic size)
C_IN = 256          # first ConvTranspose1d expects 256 input channels
CHANNELS = [256, 128, 64, 32, 9, 9]


# ------------------------------- kernel -------------------------------------

def decoder_kernel(x_ref,
                   w1_ref, b1_ref, w2_ref, b2_ref, w3_ref, b3_ref,
                   w4_ref, b4_ref, w5e_ref, w5o_ref, b5_ref,
                   out_ref):
    bb, tt, _ = x_ref.shape
    m = bb * tt

    def shifts(h3):
        # per-batch time shifts on a (B, T, C) block; zero at the boundaries.
        z = jnp.zeros_like(h3[:, :1, :])
        h_next = jnp.concatenate([h3[:, 1:, :], z], axis=1)    # h[t+1]
        h_prev = jnp.concatenate([z, h3[:, :-1, :]], axis=1)   # h[t-1]
        return h_next, h_prev

    def convT_relu(h3, w_ref, b_ref):
        # fused ConvTranspose1d(k=3, s=1, p=1) + ReLU as a single MXU matmul.
        h_next, h_prev = shifts(h3)
        x3 = jnp.concatenate([h_next, h3, h_prev], axis=-1)     # (B, T, 3*Cin)
        x2 = x3.reshape(m, x3.shape[-1]).astype(jnp.bfloat16)   # T=8 -> layout-free
        y = jnp.dot(x2, w_ref[...], preferred_element_type=jnp.float32)
        y = jnp.maximum(y + b_ref[...], 0.0)
        return y.reshape(bb, tt, y.shape[-1])

    h = x_ref[...].astype(jnp.float32)          # (B, T, 256)
    h = convT_relu(h, w1_ref, b1_ref)           # (B, T, 128)
    h = convT_relu(h, w2_ref, b2_ref)           # (B, T, 64)
    h = convT_relu(h, w3_ref, b3_ref)           # (B, T, 32)
    h = convT_relu(h, w4_ref, b4_ref)           # (B, T, 9)

    # final ConvTranspose1d(9->9, k=3, stride=2, padding=1, output_padding=1) + Tanh
    h_next, _ = shifts(h)
    h2 = h.reshape(m, 9).astype(jnp.bfloat16)
    hn2 = h_next.reshape(m, 9).astype(jnp.bfloat16)
    b5 = b5_ref[...]
    y_even = jnp.dot(h2, w5e_ref[...], preferred_element_type=jnp.float32) + b5
    x_odd = jnp.concatenate([hn2, h2], axis=-1)                 # (M, 18)
    y_odd = jnp.dot(x_odd, w5o_ref[...], preferred_element_type=jnp.float32) + b5
    # two direct stores into the (B, T, 18) slab (even | odd time steps)
    out_ref[:, :, 0:9] = jnp.tanh(y_even).reshape(bb, tt, 9)
    out_ref[:, :, 9:18] = jnp.tanh(y_odd).reshape(bb, tt, 9)


# ------------------------------- wrapper -------------------------------------

def decoder_forward(z_ncl, params, b_blk=16):
    """z_ncl: (N, 256, T) float32 in PyTorch NCL layout. Returns (N, 9, 2T).

    b_blk batches are folded into the matmul M dimension per grid step
    (M = b_blk * T; use 16 on v5e, 32 on v6e/v7x for a fuller MXU).
    """
    n, c, t = z_ncl.shape
    assert c == C_IN
    # TODO(synk): NCL->NLC transpose (and the output epilogue) are done in XLA;
    # they could be fused into the kernel to save two tiny HBM layout passes.
    x = jnp.transpose(z_ncl, (0, 2, 1)).astype(jnp.bfloat16)    # (N, T, 256) bf16

    n_blocks = -(-n // b_blk)
    n_pad = n_blocks * b_blk
    if n_pad != n:
        x = jnp.pad(x, ((0, n_pad - n), (0, 0), (0, 0)))

    # ---- weight prep (once, outside the grid): fuse taps + cast to bf16 ----
    in_specs = [pl.BlockSpec((b_blk, t, C_IN), lambda b: (b, 0, 0))]
    flat = []
    for i in range(4):
        w, bias = params[i]                                     # (3, Cin, Cout), (1, Cout)
        k, cin, cout = w.shape
        wf = w.reshape(k * cin, cout).astype(jnp.bfloat16)      # rows: [W[:,:,0];W[:,:,1];W[:,:,2]]
        bf = bias.astype(jnp.float32)
        in_specs.append(pl.BlockSpec(wf.shape, lambda b: (0, 0)))
        in_specs.append(pl.BlockSpec(bf.shape, lambda b: (0, 0)))
        flat += [wf, bf]
    w5, b5 = params[4]
    w5_even = w5[1].astype(jnp.bfloat16)                                     # (9, 9)
    w5_odd = jnp.concatenate([w5[0], w5[2]], axis=0).astype(jnp.bfloat16)    # (18, 9)
    b5f = b5.astype(jnp.float32)
    for arr in (w5_even, w5_odd, b5f):
        in_specs.append(pl.BlockSpec(arr.shape, lambda b: (0, 0)))
        flat.append(arr)

    out = pl.pallas_call(
        decoder_kernel,
        out_shape=jax.ShapeDtypeStruct((n_pad, t, 2 * 9), jnp.float32),
        grid_spec=pltpu.PrefetchScalarGridSpec(
            num_scalar_prefetch=0,
            grid=(n_blocks,),
            in_specs=in_specs,
            out_specs=pl.BlockSpec((b_blk, t, 2 * 9), lambda b: (b, 0, 0)),
        ),
        compiler_params=pltpu.CompilerParams(
            dimension_semantics=("parallel",)),   # shards across TCs on v7x when n_blocks >= 2
    )(x, *flat)

    # (N, T, 18) -> (N, T, 2, 9) -> (N, 2T, 9) -> NCL (N, 9, 2T)
    out = out[:n].reshape(n, t, 2, 9).reshape(n, 2 * t, 9)
    return jnp.transpose(out, (0, 2, 1))


def init_params(key):
    # weights stored as (k, Cin, Cout) with w[k] == torch_weight[:, :, k]
    params = []
    for i in range(5):
        cin, cout = CHANNELS[i], CHANNELS[i + 1]
        key, kw, kb = jax.random.split(key, 3)
        w = jax.random.normal(kw, (3, cin, cout), jnp.float32) * 0.1
        b = jax.random.normal(kb, (1, cout), jnp.float32) * 0.1
        params.append((w, b))
    return params


# ------------------------- pure-numpy reference ------------------------------

def conv_transpose1d_ref(x, w, b, stride, padding, output_padding):
    # x: (N, Cin, T); w: (Cin, Cout, K)  (PyTorch ConvTranspose1d layout)
    n, cin, t = x.shape
    _, cout, k = w.shape
    t_out = (t - 1) * stride - 2 * padding + k + output_padding
    y = np.zeros((n, cout, t_out), np.float64)
    for s in range(t):
        for kk in range(k):
            tt = s * stride - padding + kk
            if 0 <= tt < t_out:
                y[:, :, tt] += x[:, :, s] @ w[:, :, kk]
    return y + b[None, :, None]


def decoder_ref(z_ncl, params):
    h = np.asarray(z_ncl, np.float64)
    cfg = [(1, 1, 0)] * 4 + [(2, 1, 1)]
    for i, (w, b) in enumerate(params):
        w_pt = np.transpose(np.asarray(w, np.float64), (1, 2, 0))  # (Cin, Cout, K)
        b_pt = np.asarray(b, np.float64)[0]
        s, p, op = cfg[i]
        h = conv_transpose1d_ref(h, w_pt, b_pt, s, p, op)
        h = np.maximum(h, 0.0) if i < 4 else np.tanh(h)
    return h


# TODO(synk): the TCN_opt=True branch uses an external `TCN` module (not defined in
# baselines/AE.py) and is not implemented; conditional=False path only.

if __name__ == "__main__":
    key = jax.random.PRNGKey(0)
    key, kz = jax.random.split(key)
    z = jax.random.normal(kz, (2, C_IN, T_IN), jnp.float32)   # (N, 256, T) NCL
    params = init_params(key)

    out = decoder_forward(z, params)
    out = jax.block_until_ready(out)
    assert out.shape == (2, 9, 2 * T_IN), out.shape

    ref = decoder_ref(np.asarray(z), params)
    # bf16 matmul inputs (f32 accumulation) -> tolerance loosened accordingly.
    np.testing.assert_allclose(np.asarray(out), ref, rtol=5e-2, atol=5e-2)
    print("KERNEL_OK")
</pallas_src>

<mosaic_0001>
module attributes {stable_mosaic.version = 11 : i64} {
  func.func @decoder_kernel(%arg0: i32, %arg1: memref<16x8x256xbf16, #tpu.memory_space<vmem>>, %arg2: memref<768x128xbf16, #tpu.memory_space<vmem>>, %arg3: memref<1x128xf32, #tpu.memory_space<vmem>>, %arg4: memref<384x64xbf16, #tpu.memory_space<vmem>>, %arg5: memref<1x64xf32, #tpu.memory_space<vmem>>, %arg6: memref<192x32xbf16, #tpu.memory_space<vmem>>, %arg7: memref<1x32xf32, #tpu.memory_space<vmem>>, %arg8: memref<96x9xbf16, #tpu.memory_space<vmem>>, %arg9: memref<1x9xf32, #tpu.memory_space<vmem>>, %arg10: memref<9x9xbf16, #tpu.memory_space<vmem>>, %arg11: memref<18x9xbf16, #tpu.memory_space<vmem>>, %arg12: memref<1x9xf32, #tpu.memory_space<vmem>>, %arg13: memref<16x8x18xf32, #tpu.memory_space<vmem>>) attributes {dimension_semantics = [#tpu.dimension_semantics<parallel>], iteration_bounds = array<i64: 1>, scalar_prefetch = 0 : i64, scratch_operands = 0 : i64, tpu.core_type = #tpu.core_type<tc>, window_params = [{transform_indices = @transform_0, window_bounds = array<i64: 16, 8, 256>}, {pipeline_mode = #tpu.pipeline_mode<synchronous>, transform_indices = @transform_1, window_bounds = array<i64: 768, 128>}, {pipeline_mode = #tpu.pipeline_mode<synchronous>, transform_indices = @transform_2, window_bounds = array<i64: 1, 128>}, {pipeline_mode = #tpu.pipeline_mode<synchronous>, transform_indices = @transform_3, window_bounds = array<i64: 384, 64>}, {pipeline_mode = #tpu.pipeline_mode<synchronous>, transform_indices = @transform_4, window_bounds = array<i64: 1, 64>}, {pipeline_mode = #tpu.pipeline_mode<synchronous>, transform_indices = @transform_5, window_bounds = array<i64: 192, 32>}, {pipeline_mode = #tpu.pipeline_mode<synchronous>, transform_indices = @transform_6, window_bounds = array<i64: 1, 32>}, {pipeline_mode = #tpu.pipeline_mode<synchronous>, transform_indices = @transform_7, window_bounds = array<i64: 96, 9>}, {pipeline_mode = #tpu.pipeline_mode<synchronous>, transform_indices = @transform_8, window_bounds = array<i64: 1, 9>}, {pipeline_mode = #tpu.pipeline_mode<synchronous>, transform_indices = @transform_9, window_bounds = array<i64: 9, 9>}, {pipeline_mode = #tpu.pipeline_mode<synchronous>, transform_indices = @transform_10, window_bounds = array<i64: 18, 9>}, {pipeline_mode = #tpu.pipeline_mode<synchronous>, transform_indices = @transform_11, window_bounds = array<i64: 1, 9>}, {transform_indices = @transform_12, window_bounds = array<i64: 16, 8, 18>}]} {
    %c0 = arith.constant 0 : index
    %c0_0 = arith.constant 0 : index
    %c0_1 = arith.constant 0 : index
    %0 = vector.load %arg1[%c0, %c0_0, %c0_1] : memref<16x8x256xbf16, #tpu.memory_space<vmem>>, vector<16x8x256xbf16>
    %1 = arith.extf %0 : vector<16x8x256xbf16> to vector<16x8x256xf32>
    %cst = arith.constant 0.000000e+00 : f32
    %2 = vector.broadcast %cst : f32 to vector<16x1x256xf32>
    %3 = vector.extract_strided_slice %1 {offsets = [0, 1, 0], sizes = [16, 7, 256], strides = [1, 1, 1]} : vector<16x8x256xf32> to vector<16x7x256xf32>
    %4 = tpu.concatenate %3, %2 in 1 : vector<16x7x256xf32>, vector<16x1x256xf32> -> vector<16x8x256xf32>
    %5 = vector.extract_strided_slice %1 {offsets = [0, 0, 0], sizes = [16, 7, 256], strides = [1, 1, 1]} : vector<16x8x256xf32> to vector<16x7x256xf32>
    %6 = tpu.concatenate %2, %5 in 1 : vector<16x1x256xf32>, vector<16x7x256xf32> -> vector<16x8x256xf32>
    %7 = tpu.concatenate %4, %1, %6 in 2 : vector<16x8x256xf32>, vector<16x8x256xf32>, vector<16x8x256xf32> -> vector<16x8x768xf32>
    %8 = vector.shape_cast %7 : vector<16x8x768xf32> to vector<128x768xf32>
    %9 = arith.truncf %8 : vector<128x768xf32> to vector<128x768xbf16>
    %c0_2 = arith.constant 0 : index
    %c0_3 = arith.constant 0 : index
    %10 = vector.load %arg2[%c0_2, %c0_3] : memref<768x128xbf16, #tpu.memory_space<vmem>>, vector<768x128xbf16>
    %cst_4 = arith.constant dense<0.000000e+00> : vector<128x128xf32>
    %11 = tpu.matmul %9, %10, %cst_4 {dimension_numbers = #tpu.dot_dimension_numbers<[1], [0], [0], [1], [0, 0, 1, 1], [], []>} : vector<128x768xbf16>, vector<768x128xbf16>, vector<128x128xf32> -> vector<128x128xf32>
    %c0_5 = arith.constant 0 : index
    %c0_6 = arith.constant 0 : index
    %12 = vector.load %arg3[%c0_5, %c0_6] : memref<1x128xf32, #tpu.memory_space<vmem>>, vector<1x128xf32>
    %13 = vector.broadcast %12 : vector<1x128xf32> to vector<128x128xf32>
    %14 = arith.addf %11, %13 : vector<128x128xf32>
    %cst_7 = arith.constant 0.000000e+00 : f32
    %15 = vector.broadcast %cst_7 : f32 to vector<128x128xf32>
    %16 = arith.maximumf %14, %15 : vector<128x128xf32>
    %17 = vector.shape_cast %16 : vector<128x128xf32> to vector<16x8x128xf32>
    %cst_8 = arith.constant 0.000000e+00 : f32
    %18 = vector.broadcast %cst_8 : f32 to vector<16x1x128xf32>
    %19 = vector.extract_strided_slice %17 {offsets = [0, 1, 0], sizes = [16, 7, 128], strides = [1, 1, 1]} : vector<16x8x128xf32> to vector<16x7x128xf32>
    %20 = tpu.concatenate %19, %18 in 1 : vector<16x7x128xf32>, vector<16x1x128xf32> -> vector<16x8x128xf32>
    %21 = vector.extract_strided_slice %17 {offsets = [0, 0, 0], sizes = [16, 7, 128], strides = [1, 1, 1]} : vector<16x8x128xf32> to vector<16x7x128xf32>
    %22 = tpu.concatenate %18, %21 in 1 : vector<16x1x128xf32>, vector<16x7x128xf32> -> vector<16x8x128xf32>
    %23 = tpu.concatenate %20, %17, %22 in 2 : vector<16x8x128xf32>, vector<16x8x128xf32>, vector<16x8x128xf32> -> vector<16x8x384xf32>
    %24 = vector.shape_cast %23 : vector<16x8x384xf32> to vector<128x384xf32>
    %25 = arith.truncf %24 : vector<128x384xf32> to vector<128x384xbf16>
    %c0_9 = arith.constant 0 : index
    %c0_10 = arith.constant 0 : index
    %26 = vector.load %arg4[%c0_9, %c0_10] : memref<384x64xbf16, #tpu.memory_space<vmem>>, vector<384x64xbf16>
    %cst_11 = arith.constant dense<0.000000e+00> : vector<128x64xf32>
    %27 = tpu.matmul %25, %26, %cst_11 {dimension_numbers = #tpu.dot_dimension_numbers<[1], [0], [0], [1], [0, 0, 1, 1], [], []>} : vector<128x384xbf16>, vector<384x64xbf16>, vector<128x64xf32> -> vector<128x64xf32>
    %c0_12 = arith.constant 0 : index
    %c0_13 = arith.constant 0 : index
    %28 = vector.load %arg5[%c0_12, %c0_13] : memref<1x64xf32, #tpu.memory_space<vmem>>, vector<1x64xf32>
    %29 = vector.broadcast %28 : vector<1x64xf32> to vector<128x64xf32>
    %30 = arith.addf %27, %29 : vector<128x64xf32>
    %cst_14 = arith.constant 0.000000e+00 : f32
    %31 = vector.broadcast %cst_14 : f32 to vector<128x64xf32>
    %32 = arith.maximumf %30, %31 : vector<128x64xf32>
    %33 = vector.shape_cast %32 : vector<128x64xf32> to vector<16x8x64xf32>
    %cst_15 = arith.constant 0.000000e+00 : f32
    %34 = vector.broadcast %cst_15 : f32 to vector<16x1x64xf32>
    %35 = vector.extract_strided_slice %33 {offsets = [0, 1, 0], sizes = [16, 7, 64], strides = [1, 1, 1]} : vector<16x8x64xf32> to vector<16x7x64xf32>
    %36 = tpu.concatenate %35, %34 in 1 : vector<16x7x64xf32>, vector<16x1x64xf32> -> vector<16x8x64xf32>
    %37 = vector.extract_strided_slice %33 {offsets = [0, 0, 0], sizes = [16, 7, 64], strides = [1, 1, 1]} : vector<16x8x64xf32> to vector<16x7x64xf32>
    %38 = tpu.concatenate %34, %37 in 1 : vector<16x1x64xf32>, vector<16x7x64xf32> -> vector<16x8x64xf32>
    %39 = tpu.concatenate %36, %33, %38 in 2 : vector<16x8x64xf32>, vector<16x8x64xf32>, vector<16x8x64xf32> -> vector<16x8x192xf32>
    %40 = vector.shape_cast %39 : vector<16x8x192xf32> to vector<128x192xf32>
    %41 = arith.truncf %40 : vector<128x192xf32> to vector<128x192xbf16>
    %c0_16 = arith.constant 0 : index
    %c0_17 = arith.constant 0 : index
    %42 = vector.load %arg6[%c0_16, %c0_17] : memref<192x32xbf16, #tpu.memory_space<vmem>>, vector<192x32xbf16>
    %cst_18 = arith.constant dense<0.000000e+00> : vector<128x32xf32>
    %43 = tpu.matmul %41, %42, %cst_18 {dimension_numbers = #tpu.dot_dimension_numbers<[1], [0], [0], [1], [0, 0, 1, 1], [], []>} : vector<128x192xbf16>, vector<192x32xbf16>, vector<128x32xf32> -> vector<128x32xf32>
    %c0_19 = arith.constant 0 : index
    %c0_20 = arith.constant 0 : index
    %44 = vector.load %arg7[%c0_19, %c0_20] : memref<1x32xf32, #tpu.memory_space<vmem>>, vector<1x32xf32>
    %45 = vector.broadcast %44 : vector<1x32xf32> to vector<128x32xf32>
    %46 = arith.addf %43, %45 : vector<128x32xf32>
    %cst_21 = arith.constant 0.000000e+00 : f32
    %47 = vector.broadcast %cst_21 : f32 to vector<128x32xf32>
    %48 = arith.maximumf %46, %47 : vector<128x32xf32>
    %49 = vector.shape_cast %48 : vector<128x32xf32> to vector<16x8x32xf32>
    %cst_22 = arith.constant 0.000000e+00 : f32
    %50 = vector.broadcast %cst_22 : f32 to vector<16x1x32xf32>
    %51 = vector.extract_strided_slice %49 {offsets = [0, 1, 0], sizes = [16, 7, 32], strides = [1, 1, 1]} : vector<16x8x32xf32> to vector<16x7x32xf32>
    %52 = tpu.concatenate %51, %50 in 1 : vector<16x7x32xf32>, vector<16x1x32xf32> -> vector<16x8x32xf32>
    %53 = vector.extract_strided_slice %49 {offsets = [0, 0, 0], sizes = [16, 7, 32], strides = [1, 1, 1]} : vector<16x8x32xf32> to vector<16x7x32xf32>
    %54 = tpu.concatenate %50, %53 in 1 : vector<16x1x32xf32>, vector<16x7x32xf32> -> vector<16x8x32xf32>
    %55 = tpu.concatenate %52, %49, %54 in 2 : vector<16x8x32xf32>, vector<16x8x32xf32>, vector<16x8x32xf32> -> vector<16x8x96xf32>
    %56 = vector.shape_cast %55 : vector<16x8x96xf32> to vector<128x96xf32>
    %57 = arith.truncf %56 : vector<128x96xf32> to vector<128x96xbf16>
    %c0_23 = arith.constant 0 : index
    %c0_24 = arith.constant 0 : index
    %58 = vector.load %arg8[%c0_23, %c0_24] : memref<96x9xbf16, #tpu.memory_space<vmem>>, vector<96x9xbf16>
    %cst_25 = arith.constant dense<0.000000e+00> : vector<128x9xf32>
    %59 = tpu.matmul %57, %58, %cst_25 {dimension_numbers = #tpu.dot_dimension_numbers<[1], [0], [0], [1], [0, 0, 1, 1], [], []>} : vector<128x96xbf16>, vector<96x9xbf16>, vector<128x9xf32> -> vector<128x9xf32>
    %c0_26 = arith.constant 0 : index
    %c0_27 = arith.constant 0 : index
    %60 = vector.load %arg9[%c0_26, %c0_27] : memref<1x9xf32, #tpu.memory_space<vmem>>, vector<1x9xf32>
    %61 = vector.broadcast %60 : vector<1x9xf32> to vector<128x9xf32>
    %62 = arith.addf %59, %61 : vector<128x9xf32>
    %cst_28 = arith.constant 0.000000e+00 : f32
    %63 = vector.broadcast %cst_28 : f32 to vector<128x9xf32>
    %64 = arith.maximumf %62, %63 : vector<128x9xf32>
    %65 = vector.shape_cast %64 : vector<128x9xf32> to vector<16x8x9xf32>
    %cst_29 = arith.constant 0.000000e+00 : f32
    %66 = vector.broadcast %cst_29 : f32 to vector<16x1x9xf32>
    %67 = vector.extract_strided_slice %65 {offsets = [0, 1, 0], sizes = [16, 7, 9], strides = [1, 1, 1]} : vector<16x8x9xf32> to vector<16x7x9xf32>
    %68 = tpu.concatenate %67, %66 in 1 : vector<16x7x9xf32>, vector<16x1x9xf32> -> vector<16x8x9xf32>
    %69 = vector.shape_cast %65 : vector<16x8x9xf32> to vector<128x9xf32>
    %70 = arith.truncf %69 : vector<128x9xf32> to vector<128x9xbf16>
    %71 = vector.shape_cast %68 : vector<16x8x9xf32> to vector<128x9xf32>
    %72 = arith.truncf %71 : vector<128x9xf32> to vector<128x9xbf16>
    %c0_30 = arith.constant 0 : index
    %c0_31 = arith.constant 0 : index
    %73 = vector.load %arg12[%c0_30, %c0_31] : memref<1x9xf32, #tpu.memory_space<vmem>>, vector<1x9xf32>
    %c0_32 = arith.constant 0 : index
    %c0_33 = arith.constant 0 : index
    %74 = vector.load %arg10[%c0_32, %c0_33] : memref<9x9xbf16, #tpu.memory_space<vmem>>, vector<9x9xbf16>
    %cst_34 = arith.constant dense<0.000000e+00> : vector<128x9xf32>
    %75 = tpu.matmul %70, %74, %cst_34 {dimension_numbers = #tpu.dot_dimension_numbers<[1], [0], [0], [1], [0, 0, 1, 1], [], []>} : vector<128x9xbf16>, vector<9x9xbf16>, vector<128x9xf32> -> vector<128x9xf32>
    %76 = vector.broadcast %73 : vector<1x9xf32> to vector<128x9xf32>
    %77 = arith.addf %75, %76 : vector<128x9xf32>
    %78 = tpu.concatenate %72, %70 in 1 : vector<128x9xbf16>, vector<128x9xbf16> -> vector<128x18xbf16>
    %c0_35 = arith.constant 0 : index
    %c0_36 = arith.constant 0 : index
    %79 = vector.load %arg11[%c0_35, %c0_36] : memref<18x9xbf16, #tpu.memory_space<vmem>>, vector<18x9xbf16>
    %cst_37 = arith.constant dense<0.000000e+00> : vector<128x9xf32>
    %80 = tpu.matmul %78, %79, %cst_37 {dimension_numbers = #tpu.dot_dimension_numbers<[1], [0], [0], [1], [0, 0, 1, 1], [], []>} : vector<128x18xbf16>, vector<18x9xbf16>, vector<128x9xf32> -> vector<128x9xf32>
    %81 = vector.broadcast %73 : vector<1x9xf32> to vector<128x9xf32>
    %82 = arith.addf %80, %81 : vector<128x9xf32>
    %83 = math.tanh %77 : vector<128x9xf32>
    %84 = vector.shape_cast %83 : vector<128x9xf32> to vector<16x8x9xf32>
    %c0_38 = arith.constant 0 : index
    %c0_39 = arith.constant 0 : index
    %c0_40 = arith.constant 0 : index
    %85 = vector.load %arg13[%c0_38, %c0_39, %c0_40] : memref<16x8x18xf32, #tpu.memory_space<vmem>>, vector<16x8x9xf32>
    tpu.vector_store %arg13[%c0_38, %c0_39, %c0_40], %84 {strides = array<i32>} : memref<16x8x18xf32, #tpu.memory_space<vmem>>, vector<16x8x9xf32>,
    %86 = math.tanh %82 : vector<128x9xf32>
    %87 = vector.shape_cast %86 : vector<128x9xf32> to vector<16x8x9xf32>
    %c0_41 = arith.constant 0 : index
    %c0_42 = arith.constant 0 : index
    %c9 = arith.constant 9 : index
    %88 = vector.load %arg13[%c0_41, %c0_42, %c9] : memref<16x8x18xf32, #tpu.memory_space<vmem>>, vector<16x8x9xf32>
    tpu.vector_store %arg13[%c0_41, %c0_42, %c9], %87 {strides = array<i32>} : memref<16x8x18xf32, #tpu.memory_space<vmem>>, vector<16x8x9xf32>,
    return
  }
  func.func @transform_0(%arg0: i32) -> (i32, i32, i32) {
    %c0_i32 = arith.constant 0 : i32
    %c0_i32_0 = arith.constant 0 : i32
    %c0_i32_1 = arith.constant 0 : i32
    return %arg0, %c0_i32, %c0_i32_0 : i32, i32, i32
  }
  func.func @transform_1(%arg0: i32) -> (i32, i32) {
    %c0_i32 = arith.constant 0 : i32
    %c0_i32_0 = arith.constant 0 : i32
    %c0_i32_1 = arith.constant 0 : i32
    return %c0_i32, %c0_i32_0 : i32, i32
  }
  func.func @transform_2(%arg0: i32) -> (i32, i32) {
    %c0_i32 = arith.constant 0 : i32
    %c0_i32_0 = arith.constant 0 : i32
    %c0_i32_1 = arith.constant 0 : i32
    return %c0_i32, %c0_i32_0 : i32, i32
  }
  func.func @transform_3(%arg0: i32) -> (i32, i32) {
    %c0_i32 = arith.constant 0 : i32
    %c0_i32_0 = arith.constant 0 : i32
    %c0_i32_1 = arith.constant 0 : i32
    return %c0_i32, %c0_i32_0 : i32, i32
  }
  func.func @transform_4(%arg0: i32) -> (i32, i32) {
    %c0_i32 = arith.constant 0 : i32
    %c0_i32_0 = arith.constant 0 : i32
    %c0_i32_1 = arith.constant 0 : i32
    return %c0_i32, %c0_i32_0 : i32, i32
  }
  func.func @transform_5(%arg0: i32) -> (i32, i32) {
    %c0_i32 = arith.constant 0 : i32
    %c0_i32_0 = arith.constant 0 : i32
    %c0_i32_1 = arith.constant 0 : i32
    return %c0_i32, %c0_i32_0 : i32, i32
  }
  func.func @transform_6(%arg0: i32) -> (i32, i32) {
    %c0_i32 = arith.constant 0 : i32
    %c0_i32_0 = arith.constant 0 : i32
    %c0_i32_1 = arith.constant 0 : i32
    return %c0_i32, %c0_i32_0 : i32, i32
  }
  func.func @transform_7(%arg0: i32) -> (i32, i32) {
    %c0_i32 = arith.constant 0 : i32
    %c0_i32_0 = arith.constant 0 : i32
    %c0_i32_1 = arith.constant 0 : i32
    return %c0_i32, %c0_i32_0 : i32, i32
  }
  func.func @transform_8(%arg0: i32) -> (i32, i32) {
    %c0_i32 = arith.constant 0 : i32
    %c0_i32_0 = arith.constant 0 : i32
    %c0_i32_1 = arith.constant 0 : i32
    return %c0_i32, %c0_i32_0 : i32, i32
  }
  func.func @transform_9(%arg0: i32) -> (i32, i32) {
    %c0_i32 = arith.constant 0 : i32
    %c0_i32_0 = arith.constant 0 : i32
    %c0_i32_1 = arith.constant 0 : i32
    return %c0_i32, %c0_i32_0 : i32, i32
  }
  func.func @transform_10(%arg0: i32) -> (i32, i32) {
    %c0_i32 = arith.constant 0 : i32
    %c0_i32_0 = arith.constant 0 : i32
    %c0_i32_1 = arith.constant 0 : i32
    return %c0_i32, %c0_i32_0 : i32, i32
  }
  func.func @transform_11(%arg0: i32) -> (i32, i32) {
    %c0_i32 = arith.constant 0 : i32
    %c0_i32_0 = arith.constant 0 : i32
    %c0_i32_1 = arith.constant 0 : i32
    return %c0_i32, %c0_i32_0 : i32, i32
  }
  func.func @transform_12(%arg0: i32) -> (i32, i32, i32) {
    %c0_i32 = arith.constant 0 : i32
    %c0_i32_0 = arith.constant 0 : i32
    %c0_i32_1 = arith.constant 0 : i32
    return %arg0, %c0_i32, %c0_i32_0 : i32, i32, i32
  }
}

</mosaic_0001>

<bundles_post_ra>
// kernel: tpu_custom_call.1
= control target key start
LH: loop header
LB: loop body
LE: loop exit
PB: predicated region body
PF: predicated region fallthrough
CT: control target
= control target key end

     0   :  { %17 = vsyncpa [#allocation3], 0  ;;  %s5111_s0 = inlined_call_operand.vmem [shape: bf16[16,8,256], index: 0, kind: input, shape index: {}]   ;;  %s5112_s1 = inlined_call_operand.hbm [shape: bf16[768,128], index: 1, kind: input, shape index: {}]   ;;  %s5113_s2 = inlined_call_operand.vmem [shape: f32[1,128], index: 2, kind: input, shape index: {}]   ;;  %s5114_s3 = inlined_call_operand.vmem [shape: bf16[384,64], index: 3, kind: input, shape index: {}]   ;;  %s5115_s4 = inlined_call_operand.vmem [shape: f32[1,64], index: 4, kind: input, shape index: {}]   ;;  %s5116_s5 = inlined_call_operand.vmem [shape: bf16[192,32], index: 5, kind: input, shape index: {}]   ;;  %s5117_s6 = inlined_call_operand.vmem [shape: f32[1,32], index: 6, kind: input, shape index: {}]   ;;  %s5118_s7 = inlined_call_operand.vmem [shape: bf16[96,9], index: 7, kind: input, shape index: {}]   ;;  %s5119_s8 = inlined_call_operand.vmem [shape: f32[1,9], index: 8, kind: input, shape index: {}]   ;;  %s5120_s9 = inlined_call_operand.vmem [shape: bf16[9,9], index: 9, kind: input, shape index: {}]   ;;  %s5121_s10 = inlined_call_operand.vmem [shape: bf16[18,9], index: 10, kind: input, shape index: {}]   ;;  %s5122_s11 = inlined_call_operand.vmem [shape: f32[1,9], index: 11, kind: input, shape index: {}]   ;;  %s5123_s12 = inlined_call_operand.hbm [shape: f32[16,8,18], index: 12, kind: output, shape index: {}]  }
   0x1   :  { %18 = vsyncpa [#allocation4], 0  ;;  %s25_s23 = sshll.u32 %s5112_s1, 4  ;;  %s3899_s24 = smov [#allocation2]   ;;  %s26_s23 = int_to_ptr.hbm [resolvable:$true] %s25_s23 }
   0x2   :  { %s27_s25 = sshll.u32 %s3899_s24, 4  ;;  %s3900_s26 = smov 64   ;;  %s28_s25 = int_to_ptr.vmem [resolvable:$true] %s27_s25 }
   0x3   :  { %s3901_s27 = smov 4  }
   0x4   :  { %33 = dma.hbm_to_vmem [thread:$0]  %s26_s23, 6144, %s28_s25, [#allocation3], %s3900_s26, %s3900_s26, %s3901_s27  }
   0x5   :  { %3895 = dma.done.wait [#allocation3], 6144  }
   0x6   :  { %3896 = vsyncadd [#allocation3], 4294961152  ;;  %v3548_v0 = vld [vmem:[#allocation2 + $0x38] sm:$0xff]  ;;  %v3547_v2 = vld [vmem:[#allocation2 + $0x30] sm:$0xff]  ;;  %vm203_vm0 = vcmask 1046528   ;;  %vm300_vm2 = vcmask 1040384  }
   0x7   :  { %v3556_v1 = vld [vmem:[#allocation2 + $0x78] sm:$0xff]  ;;  %3633 = vmatpush.bf16.msra.mxu2 %v3548_v0  ;;  %v3555_v3 = vld [vmem:[#allocation2 + $0x70] sm:$0xff]  ;;  %769 = vmatpush.bf16.msra.mxu0 %v3548_v0  ;;  %v3546_v4 = vld [vmem:[#allocation2 + $0x28] sm:$0xff]  ;;  %vm1734_vm5 = vcmask 523264   ;;  %vm2229_vm6 = vcmask 261120   ;;  %vm2322_vm7 = vcmask 785408  }
   0x8   :  { %3641 = vmatpush.bf16.msra.mxu3 %v3556_v1  ;;  %818 = vmatpush.bf16.msra.mxu1 %v3556_v1  ;;  %v3554_v5 = vld [vmem:[#allocation2 + $0x68] sm:$0xff]  ;;  %v3545_v6 = vld [vmem:[#allocation2 + $0x20] sm:$0xff]  ;;  %v3544_v8 = vld [vmem:[#allocation2 + $0x18] sm:$0xff]  ;;  %vm2584_vm8 = vcmask 1043456   ;;  %vm2585_vm9 = vcmask 1044480   ;;  %vm2559_vm10 = vcmask 72704  }
   0x9   :  { %v3553_v7 = vld [vmem:[#allocation2 + $0x60] sm:$0xff]  ;;  %v3552_v9 = vld [vmem:[#allocation2 + $0x58] sm:$0xff]  ;;  %v3543_v10 = vld [vmem:[#allocation2 + $0x10] sm:$0xff]  ;;  %vm2732_vm11 = vcmask 146432   ;;  %vm2913_vm12 = vcmask 146504   ;;  %s2936_s18 = sshll.u32 %s5123_s12, 4  ;;  %s2937_s18 = int_to_ptr.hbm [resolvable:$true] %s2936_s18 }
   0xa   :  { %v3551_v11 = vld [vmem:[#allocation2 + $0x50] sm:$0xff]  ;;  %v67_v12 = vld [vmem:[%s5111_s0 + $0x40] sm:$0xff]  ;;  %v68_v13 = vld [vmem:[%s5111_s0 + $0x48] sm:$0xff]  ;;  %s3906_s19 = smov 128   ;;  %s3907_s20 = smov 8  }
   0xb   :  { %3634 = vmatpush.bf16.msra.mxu2 %v3547_v2  ;;  %770 = vmatpush.bf16.msra.mxu0 %v3547_v2  ;;  %v59_v14 = vld [vmem:[%s5111_s0] sm:$0xff]  ;;  %v60_v15 = vld [vmem:[%s5111_s0 + $0x8] sm:$0xff]  ;;  %v3990_v16 = vunpack.c.l.bf16 %v67_v12  ;;  %v3992_v17 = vunpack.c.l.bf16 %v68_v13  ;;  %v3994_v18 = vunpack.c.h.bf16 %v67_v12  ;;  %v3996_v19 = vunpack.c.h.bf16 %v68_v13  ;;  %v3564_v34 = vld [vmem:[#allocation2 + $0xb8] sm:$0xff] }
   0xc   :  { %3642 = vmatpush.bf16.msra.mxu3 %v3555_v3  ;;  %819 = vmatpush.bf16.msra.mxu1 %v3555_v3  ;;  %v3542_v20 = vld [vmem:[#allocation2 + $0x8] sm:$0xff]  ;;  %v3998_v22 = vunpack.c.l.bf16 %v59_v14  ;;  %v4000_v23 = vunpack.c.l.bf16 %v60_v15  ;;  %v4002_v24 = vunpack.c.h.bf16 %v59_v14  ;;  %v4004_v25 = vunpack.c.h.bf16 %v60_v15  ;;  %v3541_v30 = vld [vmem:[#allocation2] sm:$0xff]  ;;  %v3572_v37 = vld [vmem:[#allocation2 + $0xf8] sm:$0xff] }
   0xd   :  { %v3550_v21 = vld [vmem:[#allocation2 + $0x48] sm:$0xff]  ;;  %v155_v26 = vrot.slane %v3990_v16, 1  ;;  %v157_v27 = vrot.slane %v3992_v17, 1  ;;  %v156_v28 = vrot.slane %v3994_v18, 1  ;;  %v158_v29 = vrot.slane %v3996_v19, 1  ;;  %v3549_v31 = vld [vmem:[#allocation2 + $0x40] sm:$0xff]  ;;  %vm4016_vm1 = vmpackc.low %vm203_vm0, %vm203_vm0 }
   0xe   :  { %v139_v32 = vrot.slane %v3998_v22, 1  ;;  %v141_v33 = vrot.slane %v4000_v23, 1  ;;  %v140_v35 = vrot.slane %v4002_v24, 1  ;;  %v142_v36 = vrot.slane %v4004_v25, 1  ;;  %v3588_v42 = vld [vmem:[#allocation2 + $0x178] sm:$0xff]  ;;  %v3563_v44 = vld [vmem:[#allocation2 + $0xb0] sm:$0xff]  ;;  %vm3189_vm3 = vmneg %vm300_vm2 }
   0xf   :  { %3635 = vmatpush.bf16.msra.mxu2 %v3546_v4  ;;  %771 = vmatpush.bf16.msra.mxu0 %v3546_v4  ;;  %v3154_v38 = vpack.c.bf16 %v157_v27, %v155_v26  ;;  %v3178_v39 = vpack.c.bf16 %v158_v29, %v156_v28  ;;  %v3571_v45 = vld [vmem:[#allocation2 + $0xf0] sm:$0xff]  ;;  %v3580_v46 = vld [vmem:[#allocation2 + $0x138] sm:$0xff]  ;;  %v3562_v50 = vld [vmem:[#allocation2 + $0xa8] sm:$0xff] }
  0x10   :  { %3643 = vmatpush.bf16.msra.mxu3 %v3554_v5  ;;  %820 = vmatpush.bf16.msra.mxu1 %v3554_v5  ;;  %v3142_v41 = vpack.c.bf16 %v141_v33, %v139_v32  ;;  %v3166_v43 = vpack.c.bf16 %v142_v36, %v140_v35  ;;  %v69_v47 = vld [vmem:[%s5111_s0 + $0x50] sm:$0xff]  ;;  %v70_v48 = vld [vmem:[%s5111_s0 + $0x58] sm:$0xff]  ;;  %v3570_v53 = vld [vmem:[#allocation2 + $0xe8] sm:$0xff] }
  0x11   :  { %v3587_v49 = vld [vmem:[#allocation2 + $0x170] sm:$0xff]  ;;  %v62_v52 = vld [vmem:[%s5111_s0 + $0x18] sm:$0xff]  ;;  %v4040_v55 = vunpack.c.l.bf16 %v69_v47  ;;  %v4042_v56 = vunpack.c.l.bf16 %v70_v48  ;;  %v4044_v57 = vunpack.c.h.bf16 %v69_v47  ;;  %v4046_v58 = vunpack.c.h.bf16 %v70_v48  ;;  %v3586_v61 = vld [vmem:[#allocation2 + $0x168] sm:$0xff] }
  0x12   :  { %v61_v51 = vld [vmem:[%s5111_s0 + $0x10] sm:$0xff]  ;;  %v4050_v60 = vunpack.c.l.bf16 %v62_v52  ;;  %v4054_v63 = vunpack.c.h.bf16 %v62_v52  ;;  %v3561_v0 = vld [vmem:[#allocation2 + $0xa0] sm:$0xff]  ;;  %v3578_v2 = vld [vmem:[#allocation2 + $0x128] sm:$0xff] }
  0x13   :  { %3636 = vmatpush.bf16.msra.mxu2 %v3545_v6  ;;  %772 = vmatpush.bf16.msra.mxu0 %v3545_v6  ;;  %v3579_v54 = vld [vmem:[#allocation2 + $0x130] sm:$0xff]  ;;  %v4048_v59 = vunpack.c.l.bf16 %v61_v51  ;;  %v4052_v62 = vunpack.c.h.bf16 %v61_v51  ;;  %v3569_v1 = vld [vmem:[#allocation2 + $0xe0] sm:$0xff]  ;;  %v159_v3 = vrot.slane %v4040_v55, 1  ;;  %v161_v4 = vrot.slane %v4042_v56, 1  ;;  %v3560_v12 = vld [vmem:[#allocation2 + $0x98] sm:$0xff] }
  0x14   :  { %3644 = vmatpush.bf16.msra.mxu3 %v3553_v7  ;;  %821 = vmatpush.bf16.msra.mxu1 %v3553_v7  ;;  %v160_v5 = vrot.slane %v4044_v57, 1  ;;  %v162_v6 = vrot.slane %v4046_v58, 1  ;;  %v3568_v13 = vld [vmem:[#allocation2 + $0xd8] sm:$0xff]  ;;  %v3577_v14 = vld [vmem:[#allocation2 + $0x120] sm:$0xff]  ;;  %v3559_v28 = vld [vmem:[#allocation2 + $0x90] sm:$0xff] }
  0x15   :  { %v143_v7 = vrot.slane %v4048_v59, 1  ;;  %v3157_v15 = vpack.c.bf16 %v161_v4, %v159_v3  ;;  %v3584_v26 = vld [vmem:[#allocation2 + $0x158] sm:$0xff]  ;;  %v3567_v29 = vld [vmem:[#allocation2 + $0xd0] sm:$0xff]  ;;  %v72_v32 = vld [vmem:[%s5111_s0 + $0x68] sm:$0xff] }
  0x16   :  { %v63_v33 = vld [vmem:[%s5111_s0 + $0x20] sm:$0xff]  ;;  %v3558_v35 = vld [vmem:[#allocation2 + $0x88] sm:$0xff]  ;;  %v3583_v36 = vld [vmem:[#allocation2 + $0x150] sm:$0xff] }
  0x17   :  { %3637 = vmatpush.bf16.msra.mxu2 %v3544_v8  ;;  %773 = vmatpush.bf16.msra.mxu0 %v3544_v8  ;;  %v145_v8 = vrot.slane %v4050_v60, 1  ;;  %v3582_v47 = vld [vmem:[#allocation2 + $0x148] sm:$0xff]  ;;  %v4098_v48 = vunpack.c.h.bf16 %v63_v33  ;;  %v3565_v51 = vld [vmem:[#allocation2 + $0xc0] sm:$0xff]  ;;  %vm4185_vm4 = vmpackc.low %vm3189_vm3, %vm3189_vm3 }
  0x18   :  { %3645 = vmatpush.bf16.msra.mxu3 %v3552_v9  ;;  %822 = vmatpush.bf16.msra.mxu1 %v3552_v9  ;;  %v3585_v9 = vld [vmem:[#allocation2 + $0x160] sm:$0xff]  ;;  %v3574_v52 = vld [vmem:[#allocation2 + $0x108] sm:$0xff] }
  0x19   :  { %v148_v3 = vrot.slane %v4098_v48, 1  ;;  %v4479_v40 = vld [vmem:[%s5115_s4] ss:$0 sm:$0xff] }
  0x1b   :  { %3638 = vmatpush.bf16.msra.mxu2 %v3543_v10  ;;  %774 = vmatpush.bf16.msra.mxu0 %v3543_v10  ;;  %v144_v10 = vrot.slane %v4052_v62, 1 }
  0x1c   :  { %3646 = vmatpush.bf16.msra.mxu3 %v3551_v11  ;;  %823 = vmatpush.bf16.msra.mxu1 %v3551_v11  ;;  %v146_v11 = vrot.slane %v4054_v63, 1 }
  0x1e   :  { %v3169_v27 = vpack.c.bf16 %v146_v11, %v144_v10  ;;  %v336_v10 = vpack.c.bf16 %v4004_v25, %v4002_v24  ;;  %v236_v11 = vrot.slane %v3998_v22, 7 }
  0x1f   :  { %3639 = vmatpush.bf16.msra.mxu2 %v3542_v20  ;;  %775 = vmatpush.bf16.msra.mxu0 %v3542_v20  ;;  %v3181_v20 = vpack.c.bf16 %v162_v6, %v160_v5  ;;  %v3573_v5 = vld [vmem:[#allocation2 + $0x100] sm:$0xff] }
  0x20   :  { %3647 = vmatpush.bf16.msra.mxu3 %v3550_v21  ;;  %824 = vmatpush.bf16.msra.mxu1 %v3550_v21  ;;  %v3145_v21 = vpack.c.bf16 %v145_v8, %v143_v7 }
  0x23   :  { %3640 = vmatpush.bf16.msra.mxu2 %v3541_v30  ;;  %776 = vmatpush.bf16.msra.mxu0 %v3541_v30  ;;  %v3576_v30 = vld [vmem:[#allocation2 + $0x118] sm:$0xff] }
  0x24   :  { %3648 = vmatpush.bf16.msra.mxu3 %v3549_v31  ;;  %825 = vmatpush.bf16.msra.mxu1 %v3549_v31  ;;  %v71_v31 = vld [vmem:[%s5111_s0 + $0x60] sm:$0xff] }
  0x26   :  { %3155 = vmatmul.msk.bf16.vlgmr.msra.gmra.mxu2 %vm4016_vm1, %v3154_v38  ;;  %3143 = vmatmul.msk.bf16.vlgmr.msra.gmra.mxu0 %vm4016_vm1, %v3142_v41  ;;  %v3566_v38 = vld [vmem:[#allocation2 + $0xc8] sm:$0xff]  ;;  %v4086_v41 = vunpack.c.l.bf16 %v71_v31 }
  0x27   :  { %867 = vmatpush.bf16.msrb.mxu2 %v3564_v34  ;;  %3179 = vmatmul.msk.bf16.vlgmr.msra.gmra.mxu3 %vm4016_vm1, %v3178_v39  ;;  %v64_v34 = vld [vmem:[%s5111_s0 + $0x28] sm:$0xff]  ;;  %v3575_v39 = vld [vmem:[#allocation2 + $0x110] sm:$0xff] }
  0x28   :  { %916 = vmatpush.bf16.msrb.mxu3 %v3572_v37  ;;  %1014 = vmatpush.bf16.msrb.mxu1 %v3588_v42  ;;  %v335_v37 = vpack.c.bf16 %v4000_v23, %v3998_v22  ;;  %v4088_v42 = vunpack.c.l.bf16 %v72_v32  ;;  %v3595_v22 = vld [vmem:[%s5114_s3 + $0x30] sm:$0xff] }
  0x29   :  { %3167 = vmatmul.msk.bf16.vlgmr.msra.gmra.mxu1 %vm4016_vm1, %v3166_v43  ;;  %965 = vmatpush.bf16.msrb.mxu0 %v3580_v46  ;;  %v4090_v43 = vunpack.c.h.bf16 %v71_v31  ;;  %v4096_v46 = vunpack.c.l.bf16 %v64_v34 }
  0x2b   :  { %868 = vmatpush.bf16.msrb.mxu2 %v3563_v44  ;;  %v4092_v44 = vunpack.c.h.bf16 %v72_v32 }
  0x2c   :  { %917 = vmatpush.bf16.msrb.mxu3 %v3571_v45  ;;  %1015 = vmatpush.bf16.msrb.mxu1 %v3587_v49  ;;  %v4094_v45 = vunpack.c.l.bf16 %v63_v33  ;;  %v4100_v49 = vunpack.c.h.bf16 %v64_v34 }
  0x2d   :  { %966 = vmatpush.bf16.msrb.mxu0 %v3579_v54  ;;  %v165_v54 = vrot.slane %v4088_v42, 1 }
  0x2e   :  { %v150_v4 = vrot.slane %v4100_v49, 1 }
  0x2f   :  { %869 = vmatpush.bf16.msrb.mxu2 %v3562_v50  ;;  %v3557_v50 = vld [vmem:[#allocation2 + $0x80] sm:$0xff] }
  0x30   :  { %918 = vmatpush.bf16.msrb.mxu3 %v3570_v53  ;;  %1016 = vmatpush.bf16.msrb.mxu1 %v3586_v61  ;;  %v163_v53 = vrot.slane %v4086_v41, 1  ;;  %v164_v61 = vrot.slane %v4090_v43, 1 }
  0x31   :  { %967 = vmatpush.bf16.msrb.mxu0 %v3578_v2  ;;  %v149_v2 = vrot.slane %v4096_v46, 1 }
  0x32   :  { %v3160_v6 = vpack.c.bf16 %v165_v54, %v163_v53 }
  0x33   :  { %870 = vmatpush.bf16.msrb.mxu2 %v3561_v0  ;;  %v166_v0 = vrot.slane %v4092_v44, 1 }
  0x34   :  { %919 = vmatpush.bf16.msrb.mxu3 %v3569_v1  ;;  %1017 = vmatpush.bf16.msrb.mxu1 %v3585_v9  ;;  %v147_v1 = vrot.slane %v4094_v45, 1  ;;  %v3172_v9 = vpack.c.bf16 %v150_v4, %v148_v3  ;;  %v342_v3 = vpack.c.bf16 %v4054_v63, %v4052_v62  ;;  %v240_v4 = vrot.slane %v4048_v59, 7 }
  0x35   :  { %968 = vmatpush.bf16.msrb.mxu0 %v3577_v14  ;;  %v3184_v7 = vpack.c.bf16 %v166_v0, %v164_v61 }
  0x36   :  { %3158 = vmatmul.msk.bf16.gmra.mxu2 %vm4016_vm1, %v3157_v15  ;;  %3146 = vmatmul.msk.bf16.gmra.mxu0 %vm4016_vm1, %v3145_v21  ;;  %v3148_v8 = vpack.c.bf16 %v149_v2, %v147_v1  ;;  %v237_v15 = vrot.slane %v4002_v24, 7  ;;  %v73_v21 = vld [vmem:[%s5111_s0 + $0x70] sm:$0xff] }
  0x37   :  { %871 = vmatpush.bf16.msrb.mxu2 %v3560_v12  ;;  %3182 = vmatmul.msk.bf16.gmra.mxu3 %vm4016_vm1, %v3181_v20  ;;  %v238_v12 = vrot.slane %v4000_v23, 7  ;;  %v239_v20 = vrot.slane %v4004_v25, 7  ;;  %v65_v24 = vld [vmem:[%s5111_s0 + $0x30] sm:$0xff]  ;;  %v66_v25 = vld [vmem:[%s5111_s0 + $0x38] sm:$0xff]  ;;  %v4142_v31 = vunpack.c.h.bf16 %v73_v21 }
  0x38   :  { %920 = vmatpush.bf16.msrb.mxu3 %v3568_v13  ;;  %1018 = vmatpush.bf16.msrb.mxu1 %v3584_v26  ;;  %v3581_v13 = vld [vmem:[#allocation2 + $0x140] sm:$0xff]  ;;  %v74_v26 = vld [vmem:[%s5111_s0 + $0x78] sm:$0xff]  ;;  %v4146_v33 = vunpack.c.l.bf16 %v65_v24  ;;  %v4148_v34 = vunpack.c.l.bf16 %v66_v25  ;;  %v3603_v23 = vld [vmem:[%s5114_s3 + $0x70] sm:$0xff] }
  0x39   :  { %3170 = vmatmul.msk.bf16.gmra.mxu1 %vm4016_vm1, %v3169_v27  ;;  %969 = vmatpush.bf16.msrb.mxu0 %v3576_v30  ;;  %v3192_v14 = vpack.c.bf16 %v238_v12, %v236_v11  ;;  %v3232_v27 = vpack.c.bf16 %v239_v20, %v237_v15  ;;  %v4140_v30 = vunpack.c.l.bf16 %v74_v26  ;;  %v4144_v32 = vunpack.c.h.bf16 %v74_v26 }
  0x3a   :  { %v348_v11 = vpack.c.bf16 %v4100_v49, %v4098_v48  ;;  %v244_v12 = vrot.slane %v4094_v45, 7  ;;  %v245_v20 = vrot.slane %v4098_v48, 7  ;;  %v248_v48 = vrot.slane %v4146_v33, 7 }
  0x3b   :  { %872 = vmatpush.bf16.msrb.mxu2 %v3559_v28  ;;  %v341_v28 = vpack.c.bf16 %v4050_v60, %v4048_v59 }
  0x3c   :  { %921 = vmatpush.bf16.msrb.mxu3 %v3567_v29  ;;  %1019 = vmatpush.bf16.msrb.mxu1 %v3583_v36  ;;  %v4138_v29 = vunpack.c.l.bf16 %v73_v21  ;;  %v4152_v36 = vunpack.c.h.bf16 %v66_v25  ;;  %v247_v21 = vrot.slane %v4100_v49, 7  ;;  %v250_v49 = vrot.slane %v4148_v34, 7 }
  0x3d   :  { %970 = vmatpush.bf16.msrb.mxu0 %v3575_v39  ;;  %v169_v39 = vrot.slane %v4140_v30, 1 }
  0x3e   :  { %v154_v54 = vrot.slane %v4152_v36, 1  ;;  %v3242_v26 = vpack.c.bf16 %v247_v21, %v245_v20  ;;  %v365_v20 = vpack.c.bf16 %v4042_v56, %v4040_v55  ;;  %v366_v21 = vpack.c.bf16 %v4046_v58, %v4044_v57 }
  0x3f   :  { %873 = vmatpush.bf16.msrb.mxu2 %v3558_v35  ;;  %v4150_v35 = vunpack.c.h.bf16 %v65_v24  ;;  %v251_v24 = vrot.slane %v4152_v36, 7 }
  0x40   :  { %922 = vmatpush.bf16.msrb.mxu3 %v3566_v38  ;;  %1020 = vmatpush.bf16.msrb.mxu1 %v3582_v47  ;;  %v167_v38 = vrot.slane %v4138_v29, 1  ;;  %v168_v47 = vrot.slane %v4142_v31, 1 }
  0x41   :  { %971 = vmatpush.bf16.msrb.mxu0 %v3574_v52  ;;  %v153_v52 = vrot.slane %v4148_v34, 1  ;;  %v152_v53 = vrot.slane %v4150_v35, 1 }
  0x42   :  { %v3163_v61 = vpack.c.bf16 %v169_v39, %v167_v38  ;;  %v3609_v38 = vld [vmem:[%s5114_s3 + $0xa0] sm:$0xff]  ;;  %v252_v39 = vrot.slane %v3990_v16, 7 }
  0x43   :  { %874 = vmatpush.bf16.msrb.mxu2 %v3557_v50  ;;  %v170_v50 = vrot.slane %v4144_v32, 1  ;;  %v3175_v2 = vpack.c.bf16 %v154_v54, %v152_v53  ;;  %v359_v53 = vpack.c.bf16 %v3992_v17, %v3990_v16  ;;  %v360_v54 = vpack.c.bf16 %v3996_v19, %v3994_v18 }
  0x44   :  { %923 = vmatpush.bf16.msrb.mxu3 %v3565_v51  ;;  %1021 = vmatpush.bf16.msrb.mxu1 %v3581_v13  ;;  %v151_v51 = vrot.slane %v4146_v33, 1  ;;  %v246_v13 = vrot.slane %v4096_v46, 7 }
  0x45   :  { %972 = vmatpush.bf16.msrb.mxu0 %v3573_v5  ;;  %v3187_v0 = vpack.c.bf16 %v170_v50, %v168_v47  ;;  %v242_v5 = vrot.slane %v4050_v60, 7  ;;  %v3596_v60 = vld [vmem:[%s5114_s3 + $0x38] sm:$0xff]  ;;  %v254_v47 = vrot.slane %v3992_v17, 7 }
  0x46   :  { %3161 = vmatmul.msk.bf16.gmra.mxu2 %vm4016_vm1, %v3160_v6  ;;  %3149 = vmatmul.msk.bf16.gmra.mxu0 %vm4016_vm1, %v3148_v8  ;;  %v3151_v1 = vpack.c.bf16 %v153_v52, %v151_v51  ;;  %v243_v8 = vrot.slane %v4054_v63, 7  ;;  %v3202_v15 = vpack.c.bf16 %v246_v13, %v244_v12  ;;  %v3592_v50 = vld [vmem:[%s5114_s3 + $0x18] sm:$0xff]  ;;  %v253_v51 = vrot.slane %v3994_v18, 7  ;;  %v3619_v63 = vld [vmem:[%s5116_s5 + $0x30] sm:$0xff] }
  0x47   :  { %3185 = vmatmul.msk.bf16.gmra.mxu3 %vm4016_vm1, %v3184_v7  ;;  %v3197_v6 = vpack.c.bf16 %v242_v5, %v240_v4  ;;  %v241_v7 = vrot.slane %v4052_v62, 7  ;;  %v347_v62 = vpack.c.bf16 %v4096_v46, %v4094_v45  ;;  %1411 = vmatpush.bf16.msra.mxu2 %v3596_v60  ;;  %v3612_v45 = vld [vmem:[%s5114_s3 + $0xb8] sm:$0xff]  ;;  %v354_v46 = vpack.c.bf16 %v4152_v36, %v4150_v35  ;;  %v3601_v36 = vld [vmem:[%s5114_s3 + $0x60] sm:$0xff] }
  0x48   :  { %v255_v52 = vrot.slane %v3996_v19, 7  ;;  %v256_v60 = vrot.slane %v4040_v55, 7  ;;  %v259_v12 = vrot.slane %v4046_v58, 7 }
  0x49   :  { %3173 = vmatmul.msk.bf16.gmra.mxu1 %vm4016_vm1, %v3172_v9  ;;  %v3237_v59 = vpack.c.bf16 %v243_v8, %v241_v7  ;;  %v3604_v9 = vld [vmem:[%s5114_s3 + $0x78] sm:$0xff]  ;;  %1509 = vmatpush.bf16.msra.mxu0 %v3612_v45 }
  0x4a   :  { %1460 = vmatpush.bf16.msra.mxu3 %v3604_v9  ;;  %v3608_v8 = vld [vmem:[%s5114_s3 + $0x98] sm:$0xff]  ;;  %v258_v9 = vrot.slane %v4042_v56, 7 }
  0x4b   :  { %1412 = vmatpush.bf16.msra.mxu2 %v3595_v22 }
  0x4e   :  { %1461 = vmatpush.bf16.msra.mxu3 %v3603_v23  ;;  %v3599_v23 = vld [vmem:[%s5114_s3 + $0x50] sm:$0xff] }
  0x56   :  { %3164 = vmatmul.msk.bf16.gmra.mxu2 %vm4016_vm1, %v3163_v61  ;;  %3152 = vmatmul.msk.bf16.gmra.mxu0 %vm4016_vm1, %v3151_v1  ;;  %v4266_v61 = vld [vmem:[%s5113_s2] ss:$0 sm:$0xff] }
  0x57   :  { %3188 = vmatmul.msk.bf16.gmra.mxu3 %vm4016_vm1, %v3187_v0  ;;  %v3212_v0 = vpack.c.bf16 %v254_v47, %v252_v39 }
  0x59   :  { %3176 = vmatmul.msk.bf16.gmra.mxu1 %vm4016_vm1, %v3175_v2  ;;  %v3252_v2 = vpack.c.bf16 %v255_v52, %v253_v51  ;;  %v3598_v51 = vld [vmem:[%s5114_s3 + $0x48] sm:$0xff] }
  0x66   :  { %875 = vmatmul.bf16.vlgmr.msrb.gmra.mxu2 %v335_v37  ;;  %3193 = vmatmul.msk.bf16.vlgmr.msrb.gmra.mxu0 %vm4185_vm4, %v3192_v14  ;;  %v353_v37 = vpack.c.bf16 %v4148_v34, %v4146_v33  ;;  %v249_v14 = vrot.slane %v4150_v35, 7  ;;  %v3602_v33 = vld [vmem:[%s5114_s3 + $0x68] sm:$0xff]  ;;  %v3593_v35 = vld [vmem:[%s5114_s3 + $0x20] sm:$0xff] }
  0x67   :  { %924 = vmatmul.bf16.vlgmr.msrb.gmra.mxu3 %v336_v10  ;;  %v3207_v10 = vpack.c.bf16 %v250_v49, %v248_v48  ;;  %v3610_v34 = vld [vmem:[%s5114_s3 + $0xa8] sm:$0xff] }
  0x68   :  { %v3247_v25 = vpack.c.bf16 %v251_v24, %v249_v14  ;;  %1462 = vmatpush.bf16.msra.mxu3 %v3602_v33  ;;  %v260_v24 = vrot.slane %v4086_v41, 7  ;;  %v263_v33 = vrot.slane %v4092_v44, 7 }
  0x69   :  { %3233 = vmatmul.msk.bf16.vlgmr.msrb.gmra.mxu1 %vm4185_vm4, %v3232_v27  ;;  %v3611_v27 = vld [vmem:[%s5114_s3 + $0xb0] sm:$0xff] }
  0x6a   :  { %1510 = vmatpush.bf16.msra.mxu0 %v3611_v27  ;;  %v3590_v27 = vld [vmem:[%s5114_s3 + $0x8] sm:$0xff] }
  0x6c   :  { %1463 = vmatpush.bf16.msra.mxu3 %v3601_v36  ;;  %v371_v36 = vpack.c.bf16 %v4088_v42, %v4086_v41 }
  0x6e   :  { %1511 = vmatpush.bf16.msra.mxu0 %v3610_v34 }
  0x72   :  { %1512 = vmatpush.bf16.msra.mxu0 %v3609_v38  ;;  %v372_v38 = vpack.c.bf16 %v4092_v44, %v4090_v43 }
  0x76   :  { %880 = vmatmul.bf16.gmra.mxu2 %v341_v28  ;;  %3198 = vmatmul.msk.bf16.gmra.mxu0 %vm4185_vm4, %v3197_v6  ;;  %v3594_v28 = vld [vmem:[%s5114_s3 + $0x28] sm:$0xff] }
  0x77   :  { %929 = vmatmul.bf16.gmra.mxu3 %v342_v3  ;;  %1413 = vmatpush.bf16.msra.mxu2 %v3594_v28  ;;  %v3600_v3 = vld [vmem:[%s5114_s3 + $0x58] sm:$0xff]  ;;  %v261_v28 = vrot.slane %v4090_v43, 7 }
  0x78   :  { %1464 = vmatpush.bf16.msra.mxu3 %v3600_v3  ;;  %1513 = vmatpush.bf16.msra.mxu0 %v3608_v8  ;;  %v266_v3 = vrot.slane %v4140_v30, 7  ;;  %v378_v8 = vpack.c.bf16 %v4144_v32, %v4142_v31 }
  0x79   :  { %3238 = vmatmul.msk.bf16.gmra.mxu1 %vm4185_vm4, %v3237_v59 }
  0x7b   :  { %1414 = vmatpush.bf16.msra.mxu2 %v3593_v35 }
  0x7c   :  { %1465 = vmatpush.bf16.msra.mxu3 %v3599_v23 }
  0x7f   :  { %1415 = vmatpush.bf16.msra.mxu2 %v3592_v50  ;;  %v3262_v50 = vpack.c.bf16 %v263_v33, %v261_v28 }
  0x80   :  { %1466 = vmatpush.bf16.msra.mxu3 %v3598_v51 }
  0x86   :  { %885 = vmatmul.bf16.gmra.mxu2 %v347_v62  ;;  %3203 = vmatmul.msk.bf16.gmra.mxu0 %vm4185_vm4, %v3202_v15  ;;  %v3591_v62 = vld [vmem:[%s5114_s3 + $0x10] sm:$0xff] }
  0x87   :  { %934 = vmatmul.bf16.gmra.mxu3 %v348_v11  ;;  %v257_v11 = vrot.slane %v4044_v57, 7  ;;  %1416 = vmatpush.bf16.msra.mxu2 %v3591_v62 }
  0x89   :  { %3243 = vmatmul.msk.bf16.gmra.mxu1 %vm4185_vm4, %v3242_v26  ;;  %v3217_v26 = vpack.c.bf16 %v258_v9, %v256_v60  ;;  %v3257_v22 = vpack.c.bf16 %v259_v12, %v257_v11  ;;  %v3606_v11 = vld [vmem:[%s5114_s3 + $0x88] sm:$0xff]  ;;  %v3589_v12 = vld [vmem:[%s5114_s3] sm:$0xff] }
  0x8b   :  { %1417 = vmatpush.bf16.msra.mxu2 %v3590_v27 }
  0x8f   :  { %1418 = vmatpush.bf16.msra.mxu2 %v3589_v12 }
  0x96   :  { %890 = vmatmul.bf16.gmra.mxu2 %v353_v37  ;;  %3208 = vmatmul.msk.bf16.gmra.mxu0 %vm4185_vm4, %v3207_v10  ;;  %v3607_v10 = vld [vmem:[%s5114_s3 + $0x90] sm:$0xff] }
  0x97   :  { %939 = vmatmul.bf16.gmra.mxu3 %v354_v46  ;;  %1514 = vmatpush.bf16.msra.mxu0 %v3607_v10 }
  0x99   :  { %3248 = vmatmul.msk.bf16.gmra.mxu1 %vm4185_vm4, %v3247_v25  ;;  %v262_v25 = vrot.slane %v4088_v42, 7 }
  0x9b   :  { %v3222_v39 = vpack.c.bf16 %v262_v25, %v260_v24  ;;  %1515 = vmatpush.bf16.msra.mxu0 %v3606_v11 }
  0xa3   :  { %v778_v1 = vpop.f32.mrf.mxu0 }
  0xa4   :  { %v779_v4 = vadd.f32 %v4266_v61, %v778_v1 }
  0xa6   :  { %v827_v5 = vpop.f32.mrf.mxu1  ;;  %895 = vmatmul.bf16.gmra.mxu2 %v359_v53  ;;  %3213 = vmatmul.msk.bf16.gmra.mxu0 %vm4185_vm4, %v3212_v0 }
  0xa7   :  { %944 = vmatmul.bf16.gmra.mxu3 %v360_v54  ;;  %v4272_v16 = vadd.f32 %v827_v5, %v779_v4  ;;  %v265_v4 = vrot.slane %v4142_v31, 7  ;;  %v267_v5 = vrot.slane %v4144_v32, 7  ;;  %v3597_v32 = vld [vmem:[%s5114_s3 + $0x40] sm:$0xff] }
  0xa8   :  { %1467 = vmatpush.bf16.msra.mxu3 %v3597_v32 }
  0xa9   :  { %3253 = vmatmul.msk.bf16.gmra.mxu1 %vm4185_vm4, %v3252_v2  ;;  %v798_v17 = vpop.f32.mrf.mxu2  ;;  %v264_v2 = vrot.slane %v4138_v29, 7  ;;  %v3267_v62 = vpack.c.bf16 %v267_v5, %v265_v4 }
  0xaa   :  { %v847_v18 = vpop.f32.mrf.mxu3  ;;  %v799_v19 = vadd.f32 %v4266_v61, %v798_v17 }
  0xab   :  { %v4281_v7 = vpop.f32.mrf.mxu0  ;;  %v3227_v60 = vpack.c.bf16 %v266_v3, %v264_v2 }
  0xac   :  { %v4279_v6 = vadd.f32 %v847_v18, %v799_v19  ;;  %v377_v19 = vpack.c.bf16 %v4140_v30, %v4138_v29  ;;  %v781_v27 = vadd.f32 %v4266_v61, %v4281_v7 }
  0xae   :  { %v4286_v59 = vpop.f32.mrf.mxu1 }
  0xb1   :  { %v4295_v13 = vpop.f32.mrf.mxu2 }
  0xb2   :  { %v4297_v15 = vpop.f32.mrf.mxu3 }
  0xb3   :  { %v783_v45 = vpop.f32.mrf.mxu0 }
  0xb4   :  { %v784_v37 = vadd.f32 %v4266_v61, %v783_v45  ;;  %v3605_v45 = vld [vmem:[%s5114_s3 + $0x80] sm:$0xff] }
  0xb5   :  { %1516 = vmatpush.bf16.msra.mxu0 %v3605_v45 }
  0xb6   :  { %v832_v46 = vpop.f32.mrf.mxu1  ;;  %900 = vmatmul.bf16.gmra.mxu2 %v365_v20  ;;  %3218 = vmatmul.msk.bf16.gmra.mxu0 %vm4185_vm4, %v3217_v26 }
  0xb7   :  { %949 = vmatmul.bf16.gmra.mxu3 %v366_v21  ;;  %v4307_v48 = vadd.f32 %v832_v46, %v784_v37 }
  0xb9   :  { %3258 = vmatmul.msk.bf16.gmra.mxu1 %vm4185_vm4, %v3257_v22  ;;  %v803_v55 = vpop.f32.mrf.mxu2 }
  0xba   :  { %v852_v56 = vpop.f32.mrf.mxu3  ;;  %v804_v57 = vadd.f32 %v4266_v61, %v803_v55 }
  0xbb   :  { %v4316_v49 = vpop.f32.mrf.mxu0 }
  0xbc   :  { %v4314_v58 = vadd.f32 %v852_v56, %v804_v57 }
  0xbe   :  { %v4321_v14 = vpop.f32.mrf.mxu1 }
  0xc1   :  { %v4330_v34 = vpop.f32.mrf.mxu2 }
  0xc2   :  { %v4332_v35 = vpop.f32.mrf.mxu3 }
  0xc3   :  { %v788_v47 = vpop.f32.mrf.mxu0 }
  0xc4   :  { %v789_v52 = vadd.f32 %v4266_v61, %v788_v47 }
  0xc6   :  { %v837_v53 = vpop.f32.mrf.mxu1  ;;  %905 = vmatmul.bf16.gmra.mxu2 %v371_v36  ;;  %3223 = vmatmul.msk.bf16.gmra.mxu0 %vm4185_vm4, %v3222_v39  ;;  %v830_v39 = vadd.f32 %v4286_v59, %v781_v27 }
  0xc7   :  { %954 = vmatmul.bf16.gmra.mxu3 %v372_v38  ;;  %v4342_v54 = vadd.f32 %v837_v53, %v789_v52 }
  0xc9   :  { %3263 = vmatmul.msk.bf16.gmra.mxu1 %vm4185_vm4, %v3262_v50  ;;  %v808_v41 = vpop.f32.mrf.mxu2 }
  0xca   :  { %v857_v42 = vpop.f32.mrf.mxu3  ;;  %v809_v43 = vadd.f32 %v4266_v61, %v808_v41 }
  0xcb   :  { %v4351_v0 = vpop.f32.mrf.mxu0 }
  0xcc   :  { %v4349_v44 = vadd.f32 %v857_v42, %v809_v43 }
  0xce   :  { %v4353_v1 = vpop.f32.mrf.mxu1 }
  0xd1   :  { %v4359_v17 = vpop.f32.mrf.mxu2 }
  0xd2   :  { %v4361_v18 = vpop.f32.mrf.mxu3 }
  0xd3   :  { %v793_v9 = vpop.f32.mrf.mxu0 }
  0xd4   :  { %v794_v20 = vadd.f32 %v4266_v61, %v793_v9 }
  0xd6   :  { %v842_v21 = vpop.f32.mrf.mxu1  ;;  %910 = vmatmul.bf16.gmra.mxu2 %v377_v19  ;;  %3228 = vmatmul.msk.bf16.gmra.mxu0 %vm4185_vm4, %v3227_v60  ;;  %v786_v19 = vadd.f32 %v4266_v61, %v4316_v49 }
  0xd7   :  { %959 = vmatmul.bf16.gmra.mxu3 %v378_v8  ;;  %v4374_v29 = vadd.f32 %v842_v21, %v794_v20 }
  0xd8   :  { %v835_v32 = vadd.f32 %v4321_v14, %v786_v19 }
  0xd9   :  { %3268 = vmatmul.msk.bf16.gmra.mxu1 %vm4185_vm4, %v3267_v62  ;;  %v813_v30 = vpop.f32.mrf.mxu2 }
  0xda   :  { %v862_v31 = vpop.f32.mrf.mxu3  ;;  %v814_v26 = vadd.f32 %v4266_v61, %v813_v30 }
  0xdb   :  { %v4389_v23 = vpop.f32.mrf.mxu0 }
  0xdc   :  { %v4387_v22 = vadd.f32 %v862_v31, %v814_v26 }
  0xde   :  { %v4391_v37 = vpop.f32.mrf.mxu1 }
  0xe1   :  { %v4393_v46 = vpop.f32.mrf.mxu2 }
  0xe2   :  { %v4395_v55 = vpop.f32.mrf.mxu3 }
  0xe3   :  { %v974_v56 = vpop.f32.mrf.mxu0 }
  0xe6   :  { %v1023_v57 = vpop.f32.mrf.mxu1 }
  0xe9   :  { %v876_v10 = vpop.f32.mrf.mxu2 }
  0xea   :  { %v925_v24 = vpop.f32.mrf.mxu3  ;;  %v877_v25 = vadd.f32 %v876_v10, %v4272_v16 }
  0xeb   :  { %v976_v33 = vpop.f32.mrf.mxu0 }
  0xec   :  { %v926_v28 = vadd.f32 %v925_v24, %v877_v25 }
  0xee   :  { %v1025_v36 = vpop.f32.mrf.mxu1  ;;  %v975_v38 = vadd.f32 %v974_v56, %v926_v28 }
  0xf0   :  { %v1024_v52 = vadd.f32 %v1023_v57, %v975_v38  ;;  %v791_v38 = vadd.f32 %v4266_v61, %v4351_v0 }
  0xf1   :  { %v878_v47 = vpop.f32.mrf.mxu2 }
  0xf2   :  { %v927_v50 = vpop.f32.mrf.mxu3  ;;  %v879_v51 = vadd.f32 %v878_v47, %v830_v39  ;;  %v1063_v2 = vmax.f32 %v1024_v52, 0.0 }
  0xf3   :  { %v979_v41 = vpop.f32.mrf.mxu0 }
  0xf4   :  { %v928_v53 = vadd.f32 %v927_v50, %v879_v51  ;;  %v1095_v8 = vrot.slane %v1063_v2, 1  ;;  %v1143_v59 = vrot.slane %v1063_v2, 7 }
  0xf6   :  { %v1028_v42 = vpop.f32.mrf.mxu1  ;;  %v977_v43 = vadd.f32 %v976_v33, %v928_v53 }
  0xf8   :  { %v1026_v3 = vadd.f32 %v1025_v36, %v977_v43 }
  0xf9   :  { %v881_v16 = vpop.f32.mrf.mxu2 }
  0xfa   :  { %v930_v4 = vpop.f32.mrf.mxu3  ;;  %v1064_v5 = vmax.f32 %v1026_v3, 0.0  ;;  %v882_v7 = vadd.f32 %v881_v16, %v4307_v48  ;;  %v840_v16 = vadd.f32 %v4353_v1, %v791_v38 }
  0xfb   :  { %v981_v12 = vpop.f32.mrf.mxu0 }
  0xfc   :  { %v1096_v60 = vrot.slane %v1064_v5, 1  ;;  %v1144_v9 = vrot.slane %v1064_v5, 7  ;;  %v1192_v62 = vpack.c.bf16 %v1064_v5, %v1063_v2  ;;  %v931_v11 = vadd.f32 %v930_v4, %v882_v7 }
  0xfe   :  { %v1030_v20 = vpop.f32.mrf.mxu1  ;;  %v3366_v21 = vpack.c.bf16 %v1096_v60, %v1095_v8  ;;  %v3392_v30 = vpack.c.bf16 %v1144_v9, %v1143_v59  ;;  %1468 = vmatmul.bf16.vlgmr.msra.gmra.mxu3 %v1192_v62  ;;  %v980_v31 = vadd.f32 %v979_v41, %v931_v11 }
 0x100   :  { %3367 = vmatmul.msk.bf16.vlgmr.msra.gmra.mxu2 %vm4016_vm1, %v3366_v21  ;;  %3393 = vmatmul.msk.bf16.vlgmr.msra.gmra.mxu0 %vm4185_vm4, %v3392_v30  ;;  %v1029_v45 = vadd.f32 %v1028_v42, %v980_v31 }
 0x101   :  { %v883_v48 = vpop.f32.mrf.mxu2 }
 0x102   :  { %v932_v49 = vpop.f32.mrf.mxu3  ;;  %v884_v26 = vadd.f32 %v883_v48, %v835_v32  ;;  %v1065_v25 = vmax.f32 %v1029_v45, 0.0 }
 0x103   :  { %v984_v57 = vpop.f32.mrf.mxu0 }
 0x104   :  { %v933_v56 = vadd.f32 %v932_v49, %v884_v26  ;;  %v1097_v39 = vrot.slane %v1065_v25, 1  ;;  %v1145_v47 = vrot.slane %v1065_v25, 7 }
 0x106   :  { %v1033_v10 = vpop.f32.mrf.mxu1  ;;  %v982_v24 = vadd.f32 %v981_v12, %v933_v56 }
 0x108   :  { %v1031_v27 = vadd.f32 %v1030_v20, %v982_v24  ;;  %v796_v20 = vadd.f32 %v4266_v61, %v4389_v23 }
 0x109   :  { %v886_v28 = vpop.f32.mrf.mxu2 }
 0x10a   :  { %v935_v33 = vpop.f32.mrf.mxu3  ;;  %v1066_v36 = vmax.f32 %v1031_v27, 0.0  ;;  %v887_v14 = vadd.f32 %v886_v28, %v4342_v54  ;;  %v845_v24 = vadd.f32 %v4391_v37, %v796_v20 }
 0x10b   :  { %v986_v51 = vpop.f32.mrf.mxu0 }
 0x10c   :  { %v936_v50 = vadd.f32 %v935_v33, %v887_v14  ;;  %v1195_v52 = vpack.c.bf16 %v1066_v36, %v1065_v25  ;;  %v1098_v53 = vrot.slane %v1066_v36, 1  ;;  %v1146_v41 = vrot.slane %v1066_v36, 7 }
 0x10e   :  { %v1035_v42 = vpop.f32.mrf.mxu1  ;;  %1473 = vmatmul.bf16.gmra.mxu3 %v1195_v52  ;;  %v3369_v43 = vpack.c.bf16 %v1098_v53, %v1097_v39  ;;  %v3397_v2 = vpack.c.bf16 %v1146_v41, %v1145_v47  ;;  %v985_v3 = vadd.f32 %v984_v57, %v936_v50  ;;  %v801_v52 = vadd.f32 %v4266_v61, %v4295_v13 }
 0x110   :  { %3370 = vmatmul.msk.bf16.gmra.mxu2 %vm4016_vm1, %v3369_v43  ;;  %3398 = vmatmul.msk.bf16.gmra.mxu0 %vm4185_vm4, %v3397_v2  ;;  %v1034_v5 = vadd.f32 %v1033_v10, %v985_v3 }
 0x111   :  { %v888_v54 = vpop.f32.mrf.mxu2 }
 0x112   :  { %v937_v0 = vpop.f32.mrf.mxu3  ;;  %v889_v4 = vadd.f32 %v888_v54, %v840_v16  ;;  %v1067_v60 = vmax.f32 %v1034_v5, 0.0 }
 0x113   :  { %v989_v19 = vpop.f32.mrf.mxu0 }
 0x114   :  { %v938_v7 = vadd.f32 %v937_v0, %v889_v4  ;;  %v1099_v21 = vrot.slane %v1067_v60, 1  ;;  %v1147_v30 = vrot.slane %v1067_v60, 7 }
 0x116   :  { %v1038_v8 = vpop.f32.mrf.mxu1  ;;  %v987_v59 = vadd.f32 %v986_v51, %v938_v7  ;;  %v850_v7 = vadd.f32 %v4297_v15, %v801_v52 }
 0x118   :  { %v1036_v9 = vadd.f32 %v1035_v42, %v987_v59 }
 0x119   :  { %v891_v62 = vpop.f32.mrf.mxu2 }
 0x11a   :  { %v940_v11 = vpop.f32.mrf.mxu3  ;;  %v1068_v12 = vmax.f32 %v1036_v9, 0.0  ;;  %v892_v1 = vadd.f32 %v891_v62, %v4374_v29 }
 0x11b   :  { %v991_v32 = vpop.f32.mrf.mxu0 }
 0x11c   :  { %v941_v31 = vadd.f32 %v940_v11, %v892_v1  ;;  %v1198_v48 = vpack.c.bf16 %v1068_v12, %v1067_v60  ;;  %v1100_v49 = vrot.slane %v1068_v12, 1  ;;  %v1148_v26 = vrot.slane %v1068_v12, 7 }
 0x11e   :  { %v1040_v45 = vpop.f32.mrf.mxu1  ;;  %1478 = vmatmul.bf16.gmra.mxu3 %v1198_v48  ;;  %v3372_v56 = vpack.c.bf16 %v1100_v49, %v1099_v21  ;;  %v3402_v57 = vpack.c.bf16 %v1148_v26, %v1147_v30  ;;  %v990_v10 = vadd.f32 %v989_v19, %v941_v31  ;;  %v806_v30 = vadd.f32 %v4266_v61, %v4330_v34 }
 0x120   :  { %3373 = vmatmul.msk.bf16.gmra.mxu2 %vm4016_vm1, %v3372_v56  ;;  %3403 = vmatmul.msk.bf16.gmra.mxu0 %vm4185_vm4, %v3402_v57  ;;  %v1039_v27 = vadd.f32 %v1038_v8, %v990_v10 }
 0x121   :  { %v893_v29 = vpop.f32.mrf.mxu2 }
 0x122   :  { %v942_v23 = vpop.f32.mrf.mxu3  ;;  %v894_v25 = vadd.f32 %v893_v29, %v845_v24  ;;  %v1069_v38 = vmax.f32 %v1039_v27, 0.0  ;;  %v855_v29 = vadd.f32 %v4332_v35, %v806_v30 }
 0x123   :  { %v994_v33 = vpop.f32.mrf.mxu0 }
 0x124   :  { %v943_v28 = vadd.f32 %v942_v23, %v894_v25  ;;  %v1101_v53 = vrot.slane %v1069_v38, 1  ;;  %v1149_v41 = vrot.slane %v1069_v38, 7 }
 0x126   :  { %v1043_v36 = vpop.f32.mrf.mxu1  ;;  %v992_v14 = vadd.f32 %v991_v32, %v943_v28 }
 0x128   :  { %v1041_v39 = vadd.f32 %v1040_v45, %v992_v14 }
 0x129   :  { %v896_v47 = vpop.f32.mrf.mxu2 }
 0x12a   :  { %v945_v50 = vpop.f32.mrf.mxu3  ;;  %v1070_v51 = vmax.f32 %v1041_v39, 0.0  ;;  %v897_v37 = vadd.f32 %v896_v47, %v4279_v6 }
 0x12b   :  { %v996_v43 = vpop.f32.mrf.mxu0 }
 0x12c   :  { %v946_v42 = vadd.f32 %v945_v50, %v897_v37  ;;  %v1201_v2 = vpack.c.bf16 %v1070_v51, %v1069_v38  ;;  %v1102_v3 = vrot.slane %v1070_v51, 1  ;;  %v1150_v16 = vrot.slane %v1070_v51, 7 }
 0x12d   :  { %v811_v51 = vadd.f32 %v4266_v61, %v4359_v17 }
 0x12e   :  { %v1045_v54 = vpop.f32.mrf.mxu1  ;;  %1483 = vmatmul.bf16.gmra.mxu3 %v1201_v2  ;;  %v3375_v0 = vpack.c.bf16 %v1102_v3, %v1101_v53  ;;  %v3407_v4 = vpack.c.bf16 %v1150_v16, %v1149_v41  ;;  %v995_v5 = vadd.f32 %v994_v33, %v946_v42 }
 0x130   :  { %3376 = vmatmul.msk.bf16.gmra.mxu2 %vm4016_vm1, %v3375_v0  ;;  %3408 = vmatmul.msk.bf16.gmra.mxu0 %vm4185_vm4, %v3407_v4  ;;  %v1044_v8 = vadd.f32 %v1043_v36, %v995_v5  ;;  %v860_v0 = vadd.f32 %v4361_v18, %v811_v51 }
 0x131   :  { %v898_v6 = vpop.f32.mrf.mxu2 }
 0x132   :  { %v947_v13 = vpop.f32.mrf.mxu3  ;;  %v899_v19 = vadd.f32 %v898_v6, %v850_v7  ;;  %v1071_v11 = vmax.f32 %v1044_v8, 0.0 }
 0x133   :  { %v999_v60 = vpop.f32.mrf.mxu0 }
 0x134   :  { %v948_v59 = vadd.f32 %v947_v13, %v899_v19  ;;  %v1103_v31 = vrot.slane %v1071_v11, 1  ;;  %v1151_v32 = vrot.slane %v1071_v11, 7 }
 0x136   :  { %v997_v9 = vadd.f32 %v996_v43, %v948_v59  ;;  %v1048_v62 = vpop.f32.mrf.mxu1 }
 0x138   :  { %v1046_v12 = vadd.f32 %v1045_v54, %v997_v9 }
 0x139   :  { %v901_v1 = vpop.f32.mrf.mxu2 }
 0x13a   :  { %v950_v20 = vpop.f32.mrf.mxu3  ;;  %v1072_v21 = vmax.f32 %v1046_v12, 0.0  ;;  %v902_v15 = vadd.f32 %v901_v1, %v4314_v58 }
 0x13b   :  { %v1001_v56 = vpop.f32.mrf.mxu0 }
 0x13c   :  { %v951_v48 = vadd.f32 %v950_v20, %v902_v15  ;;  %v1204_v49 = vpack.c.bf16 %v1072_v21, %v1071_v11  ;;  %v1104_v26 = vrot.slane %v1072_v21, 1  ;;  %v1152_v45 = vrot.slane %v1072_v21, 7 }
 0x13d   :  { %v816_v11 = vadd.f32 %v4266_v61, %v4393_v46 }
 0x13e   :  { %1488 = vmatmul.bf16.gmra.mxu3 %v1204_v49  ;;  %v3378_v57 = vpack.c.bf16 %v1104_v26, %v1103_v31  ;;  %v3412_v10 = vpack.c.bf16 %v1152_v45, %v1151_v32  ;;  %v1000_v24 = vadd.f32 %v999_v60, %v951_v48  ;;  %v1050_v23 = vpop.f32.mrf.mxu1 }
 0x13f   :  { %v865_v45 = vadd.f32 %v4395_v55, %v816_v11  ;;  %v3624_v55 = vld [vmem:[%s5116_s5 + $0x58] sm:$0xff] }
 0x140   :  { %3379 = vmatmul.msk.bf16.gmra.mxu2 %vm4016_vm1, %v3378_v57  ;;  %3413 = vmatmul.msk.bf16.gmra.mxu0 %vm4185_vm4, %v3412_v10  ;;  %v1049_v27 = vadd.f32 %v1048_v62, %v1000_v24 }
 0x141   :  { %v903_v58 = vpop.f32.mrf.mxu2  ;;  %1944 = vmatpush.bf16.msrb.mxu2 %v3624_v55 }
 0x142   :  { %v952_v34 = vpop.f32.mrf.mxu3  ;;  %v904_v25 = vadd.f32 %v903_v58, %v855_v29  ;;  %v1073_v36 = vmax.f32 %v1049_v27, 0.0 }
 0x143   :  { %v1004_v38 = vpop.f32.mrf.mxu0 }
 0x144   :  { %v953_v28 = vadd.f32 %v952_v34, %v904_v25  ;;  %v1105_v52 = vrot.slane %v1073_v36, 1  ;;  %v1153_v53 = vrot.slane %v1073_v36, 7 }
 0x146   :  { %v1002_v33 = vadd.f32 %v1001_v56, %v953_v28  ;;  %v1053_v37 = vpop.f32.mrf.mxu1 }
 0x148   :  { %v1051_v14 = vadd.f32 %v1050_v23, %v1002_v33 }
 0x149   :  { %v906_v39 = vpop.f32.mrf.mxu2 }
 0x14a   :  { %v955_v47 = vpop.f32.mrf.mxu3  ;;  %v1074_v50 = vmax.f32 %v1051_v14, 0.0  ;;  %v907_v35 = vadd.f32 %v906_v39, %v4349_v44  ;;  %v3623_v14 = vld [vmem:[%s5116_s5 + $0x50] sm:$0xff] }
 0x14b   :  { %v1006_v7 = vpop.f32.mrf.mxu0  ;;  %1945 = vmatpush.bf16.msrb.mxu2 %v3623_v14  ;;  %v3616_v14 = vld [vmem:[%s5116_s5 + $0x18] sm:$0xff] }
 0x14c   :  { %v956_v41 = vadd.f32 %v955_v47, %v907_v35  ;;  %v1207_v42 = vpack.c.bf16 %v1074_v50, %v1073_v36  ;;  %v1106_v43 = vrot.slane %v1074_v50, 1  ;;  %v1154_v2 = vrot.slane %v1074_v50, 7  ;;  %v3620_v47 = vld [vmem:[%s5116_s5 + $0x38] sm:$0xff]  ;;  %v3622_v50 = vld [vmem:[%s5116_s5 + $0x48] sm:$0xff]  ;;  %v3621_v35 = vld [vmem:[%s5116_s5 + $0x40] sm:$0xff] }
 0x14d   :  { %1891 = vmatpush.bf16.msra.mxu1 %v3620_v47 }
 0x14e   :  { %1493 = vmatmul.bf16.gmra.mxu3 %v1207_v42  ;;  %v3381_v3 = vpack.c.bf16 %v1106_v43, %v1105_v52  ;;  %v3417_v16 = vpack.c.bf16 %v1154_v2, %v1153_v53  ;;  %v1005_v54 = vadd.f32 %v1004_v38, %v956_v41  ;;  %v1055_v13 = vpop.f32.mrf.mxu1 }
 0x14f   :  { %1946 = vmatpush.bf16.msrb.mxu2 %v3622_v50 }
 0x150   :  { %3382 = vmatmul.msk.bf16.gmra.mxu2 %vm4016_vm1, %v3381_v3  ;;  %3418 = vmatmul.msk.bf16.gmra.mxu0 %vm4185_vm4, %v3417_v16  ;;  %v1054_v5 = vadd.f32 %v1053_v37, %v1005_v54 }
 0x151   :  { %v908_v44 = vpop.f32.mrf.mxu2  ;;  %1892 = vmatpush.bf16.msra.mxu1 %v3619_v63 }
 0x152   :  { %v957_v17 = vpop.f32.mrf.mxu3  ;;  %v909_v4 = vadd.f32 %v908_v44, %v860_v0  ;;  %v1075_v8 = vmax.f32 %v1054_v5, 0.0 }
 0x153   :  { %v1009_v12 = vpop.f32.mrf.mxu0  ;;  %1947 = vmatpush.bf16.msrb.mxu2 %v3621_v35 }
 0x154   :  { %v958_v6 = vadd.f32 %v957_v17, %v909_v4  ;;  %v1107_v1 = vrot.slane %v1075_v8, 1  ;;  %v1155_v20 = vrot.slane %v1075_v8, 7  ;;  %v3618_v17 = vld [vmem:[%s5116_s5 + $0x28] sm:$0xff] }
 0x155   :  { %1893 = vmatpush.bf16.msra.mxu1 %v3618_v17 }
 0x156   :  { %v1007_v19 = vadd.f32 %v1006_v7, %v958_v6  ;;  %v1058_v32 = vpop.f32.mrf.mxu1 }
 0x158   :  { %v1056_v59 = vadd.f32 %v1055_v13, %v1007_v19 }
 0x159   :  { %v911_v60 = vpop.f32.mrf.mxu2 }
 0x15a   :  { %v960_v9 = vpop.f32.mrf.mxu3  ;;  %v1076_v62 = vmax.f32 %v1056_v59, 0.0  ;;  %v912_v18 = vadd.f32 %v911_v60, %v4387_v22 }
 0x15b   :  { %v1011_v10 = vpop.f32.mrf.mxu0 }
 0x15c   :  { %v961_v21 = vadd.f32 %v960_v9, %v912_v18  ;;  %v1210_v15 = vpack.c.bf16 %v1076_v62, %v1075_v8  ;;  %v1108_v30 = vrot.slane %v1076_v62, 1  ;;  %v1156_v31 = vrot.slane %v1076_v62, 7 }
 0x15e   :  { %1498 = vmatmul.bf16.gmra.mxu3 %v1210_v15  ;;  %v3384_v48 = vpack.c.bf16 %v1108_v30, %v1107_v1  ;;  %v3422_v49 = vpack.c.bf16 %v1156_v31, %v1155_v20  ;;  %v1010_v26 = vadd.f32 %v1009_v12, %v961_v21  ;;  %v1060_v23 = vpop.f32.mrf.mxu1 }
 0x160   :  { %3385 = vmatmul.msk.bf16.gmra.mxu2 %vm4016_vm1, %v3384_v48  ;;  %3423 = vmatmul.msk.bf16.gmra.mxu0 %vm4185_vm4, %v3422_v49  ;;  %v1059_v46 = vadd.f32 %v1058_v32, %v1010_v26  ;;  %v3617_v48 = vld [vmem:[%s5116_s5 + $0x20] sm:$0xff] }
 0x161   :  { %v913_v61 = vpop.f32.mrf.mxu2  ;;  %1894 = vmatpush.bf16.msra.mxu1 %v3617_v48 }
 0x162   :  { %v914_v22 = vadd.f32 %v913_v61, %v865_v45  ;;  %v962_v56 = vpop.f32.mrf.mxu3  ;;  %v1077_v29 = vmax.f32 %v1059_v46, 0.0 }
 0x164   :  { %v963_v57 = vadd.f32 %v962_v56, %v914_v22  ;;  %v1109_v25 = vrot.slane %v1077_v29, 1  ;;  %v1157_v27 = vrot.slane %v1077_v29, 7 }
 0x165   :  { %1895 = vmatpush.bf16.msra.mxu1 %v3616_v14 }
 0x166   :  { %v1012_v24 = vadd.f32 %v1011_v10, %v963_v57 }
 0x168   :  { %v1061_v58 = vadd.f32 %v1060_v23, %v1012_v24 }
 0x16a   :  { %v1078_v34 = vmax.f32 %v1061_v58, 0.0 }
 0x16c   :  { %v1110_v28 = vrot.slane %v1078_v34, 1  ;;  %v1158_v33 = vrot.slane %v1078_v34, 7  ;;  %v1213_v36 = vpack.c.bf16 %v1078_v34, %v1077_v29 }
 0x16e   :  { %1503 = vmatmul.bf16.gmra.mxu3 %v1213_v36  ;;  %v3387_v38 = vpack.c.bf16 %v1110_v28, %v1109_v25  ;;  %v3427_v39 = vpack.c.bf16 %v1158_v33, %v1157_v27 }
 0x170   :  { %3388 = vmatmul.msk.bf16.gmra.mxu2 %vm4016_vm1, %v3387_v38  ;;  %3428 = vmatmul.msk.bf16.gmra.mxu0 %vm4185_vm4, %v3427_v39 }
 0x17d   :  { %v1518_v51 = vpop.f32.mrf.mxu0 }
 0x181   :  { %v1469_v37 = vpop.f32.mrf.mxu3 }
 0x183   :  { %v1420_v52 = vpop.f32.mrf.mxu2 }
 0x184   :  { %v1421_v53 = vadd.f32 %v4479_v40, %v1420_v52 }
 0x185   :  { %v1520_v41 = vpop.f32.mrf.mxu0 }
 0x186   :  { %v1470_v42 = vadd.f32 %v1469_v37, %v1421_v53 }
 0x188   :  { %v1519_v2 = vadd.f32 %v1518_v51, %v1470_v42 }
 0x189   :  { %v1471_v43 = vpop.f32.mrf.mxu3 }
 0x18a   :  { %v4486_v44 = vmax.f32 %v1519_v2, 0.0 }
 0x18b   :  { %v1422_v3 = vpop.f32.mrf.mxu2 }
 0x18c   :  { %v1423_v16 = vadd.f32 %v4479_v40, %v1422_v3  ;;  %v1638_v6 = vrot.slane %v4486_v44, 7 }
 0x18d   :  { %v1523_v54 = vpop.f32.mrf.mxu0 }
 0x18e   :  { %v1472_v0 = vadd.f32 %v1471_v43, %v1423_v16  ;;  %v1670_v18 = vsel %vm300_vm2, 0.0, %v1638_v6 }
 0x190   :  { %v1521_v4 = vadd.f32 %v1520_v41, %v1472_v0 }
 0x191   :  { %v1474_v5 = vpop.f32.mrf.mxu3 }
 0x192   :  { %v4491_v7 = vmax.f32 %v1521_v4, 0.0 }
 0x193   :  { %v1425_v13 = vpop.f32.mrf.mxu2 }
 0x194   :  { %v1426_v19 = vadd.f32 %v4479_v40, %v1425_v13  ;;  %v1639_v8 = vrot.slane %v4491_v7, 7  ;;  %v3658_v59 = vpack.i.bf16 %v4491_v7, %v4486_v44 }
 0x195   :  { %v1525_v60 = vpop.f32.mrf.mxu0 }
 0x196   :  { %v1475_v9 = vadd.f32 %v1474_v5, %v1426_v19  ;;  %v1671_v62 = vsel %vm300_vm2, 0.0, %v1639_v8  ;;  %3659 = vrot.lane.b32.xlu0 %v3658_v59, %s3900_s26 }
 0x197   :  { %v1752_v11 = vpack.c.bf16 %v1671_v62, %v1670_v18 }
 0x198   :  { %v1524_v1 = vadd.f32 %v1523_v54, %v1475_v9  ;;  %v3615_v9 = vld [vmem:[%s5116_s5 + $0x10] sm:$0xff] }
 0x199   :  { %v1476_v12 = vpop.f32.mrf.mxu3  ;;  %3477 = vmatmul.msk.bf16.vlgmr.msrb.gmra.mxu2 %vm1734_vm5, %v1752_v11  ;;  %1896 = vmatpush.bf16.msra.mxu1 %v3615_v9 }
 0x19a   :  { %v4503_v30 = vmax.f32 %v1524_v1, 0.0 }
 0x19b   :  { %v1427_v20 = vpop.f32.mrf.mxu2 }
 0x19c   :  { %v1428_v21 = vadd.f32 %v4479_v40, %v1427_v20  ;;  %v1640_v26 = vrot.slane %v4503_v30, 7 }
 0x19d   :  { %v1528_v15 = vpop.f32.mrf.mxu0 }
 0x19e   :  { %v1477_v31 = vadd.f32 %v1476_v12, %v1428_v21  ;;  %v1672_v24 = vsel %vm300_vm2, 0.0, %v1640_v26 }
 0x1a0   :  { %v1526_v32 = vadd.f32 %v1525_v60, %v1477_v31 }
 0x1a1   :  { %v1479_v49 = vpop.f32.mrf.mxu3 }
 0x1a2   :  { %v4509_v45 = vmax.f32 %v1526_v32, 0.0 }
 0x1a3   :  { %v1430_v61 = vpop.f32.mrf.mxu2 }
 0x1a4   :  { %v1431_v22 = vadd.f32 %v4479_v40, %v1430_v61  ;;  %v3663_v46 = vpack.i.bf16 %v4509_v45, %v4503_v30  ;;  %v1641_v56 = vrot.slane %v4509_v45, 7 }
 0x1a5   :  { %v1530_v57 = vpop.f32.mrf.mxu0 }
 0x1a6   :  { %v1480_v10 = vadd.f32 %v1479_v49, %v1431_v22  ;;  %3664 = vrot.lane.b32.xlu0 %v3663_v46, %s3900_s26  ;;  %v1673_v29 = vsel %vm300_vm2, 0.0, %v1641_v56 }
 0x1a7   :  { %v1754_v23 = vpack.c.bf16 %v1673_v29, %v1672_v24  ;;  %v3614_v29 = vld [vmem:[%s5116_s5 + $0x8] sm:$0xff] }
 0x1a8   :  { %v1529_v55 = vadd.f32 %v1528_v15, %v1480_v10  ;;  %1897 = vmatpush.bf16.msra.mxu1 %v3614_v29 }
 0x1a9   :  { %v1481_v58 = vpop.f32.mrf.mxu3  ;;  %3478 = vmatmul.msk.bf16.gmra.mxu2 %vm1734_vm5, %v1754_v23 }
 0x1aa   :  { %v4520_v33 = vmax.f32 %v1529_v55, 0.0 }
 0x1ab   :  { %v1432_v34 = vpop.f32.mrf.mxu2 }
 0x1ac   :  { %v1433_v25 = vadd.f32 %v4479_v40, %v1432_v34  ;;  %v1642_v47 = vrot.slane %v4520_v33, 7 }
 0x1ad   :  { %v1533_v27 = vpop.f32.mrf.mxu0 }
 0x1ae   :  { %v1482_v28 = vadd.f32 %v1481_v58, %v1433_v25  ;;  %v1674_v53 = vsel %vm300_vm2, 0.0, %v1642_v47 }
 0x1b0   :  { %v1531_v36 = vadd.f32 %v1530_v57, %v1482_v28 }
 0x1b1   :  { %v1484_v38 = vpop.f32.mrf.mxu3 }
 0x1b2   :  { %v4525_v39 = vmax.f32 %v1531_v36, 0.0 }
 0x1b3   :  { %v1435_v50 = vpop.f32.mrf.mxu2 }
 0x1b4   :  { %v1436_v35 = vadd.f32 %v4479_v40, %v1435_v50  ;;  %v1643_v51 = vrot.slane %v4525_v39, 7  ;;  %v3668_v63 = vpack.i.bf16 %v4525_v39, %v4520_v33 }
 0x1b5   :  { %v1535_v37 = vpop.f32.mrf.mxu0 }
 0x1b6   :  { %v1485_v52 = vadd.f32 %v1484_v38, %v1436_v35  ;;  %3669 = vrot.lane.b32.xlu1 %v3668_v63, %s3900_s26  ;;  %v1675_v41 = vsel %vm300_vm2, 0.0, %v1643_v51 }
 0x1b7   :  { %v1756_v42 = vpack.c.bf16 %v1675_v41, %v1674_v53 }
 0x1b8   :  { %v1534_v2 = vadd.f32 %v1533_v27, %v1485_v52 }
 0x1b9   :  { %v1486_v43 = vpop.f32.mrf.mxu3  ;;  %3479 = vmatmul.msk.bf16.gmra.mxu2 %vm1734_vm5, %v1756_v42 }
 0x1ba   :  { %v4537_v0 = vmax.f32 %v1534_v2, 0.0 }
 0x1bb   :  { %v1437_v3 = vpop.f32.mrf.mxu2 }
 0x1bc   :  { %v1438_v16 = vadd.f32 %v4479_v40, %v1437_v3  ;;  %v1644_v6 = vrot.slane %v4537_v0, 7 }
 0x1bd   :  { %v1538_v54 = vpop.f32.mrf.mxu0 }
 0x1be   :  { %v1487_v17 = vadd.f32 %v1486_v43, %v1438_v16  ;;  %v1676_v11 = vsel %vm300_vm2, 0.0, %v1644_v6  ;;  %v3613_v43 = vld [vmem:[%s5116_s5] sm:$0xff] }
 0x1bf   :  { %1898 = vmatpush.bf16.msra.mxu1 %v3613_v43 }
 0x1c0   :  { %v1536_v4 = vadd.f32 %v1535_v37, %v1487_v17 }
 0x1c1   :  { %v1489_v5 = vpop.f32.mrf.mxu3 }
 0x1c2   :  { %v4540_v13 = vmax.f32 %v1536_v4, 0.0 }
 0x1c3   :  { %v1440_v19 = vpop.f32.mrf.mxu2 }
 0x1c4   :  { %v1441_v8 = vadd.f32 %v4479_v40, %v1440_v19  ;;  %v3673_v59 = vpack.i.bf16 %v4540_v13, %v4537_v0  ;;  %v1645_v60 = vrot.slane %v4540_v13, 7 }
 0x1c5   :  { %v1540_v62 = vpop.f32.mrf.mxu0 }
 0x1c6   :  { %v1490_v18 = vadd.f32 %v1489_v5, %v1441_v8  ;;  %3674 = vrot.lane.b32.xlu1 %v3673_v59, %s3900_s26  ;;  %v1677_v12 = vsel %vm300_vm2, 0.0, %v1645_v60 }
 0x1c7   :  { %v1758_v1 = vpack.c.bf16 %v1677_v12, %v1676_v11 }
 0x1c8   :  { %v1539_v21 = vadd.f32 %v1538_v54, %v1490_v18 }
 0x1c9   :  { %v1491_v20 = vpop.f32.mrf.mxu3  ;;  %3480 = vmatmul.msk.bf16.gmra.mxu2 %vm1734_vm5, %v1758_v1 }
 0x1ca   :  { %v4554_v49 = vmax.f32 %v1539_v21, 0.0 }
 0x1cb   :  { %v1442_v15 = vpop.f32.mrf.mxu2 }
 0x1cc   :  { %v1443_v31 = vadd.f32 %v4479_v40, %v1442_v15  ;;  %v1646_v46 = vrot.slane %v4554_v49, 7 }
 0x1cd   :  { %v1543_v32 = vpop.f32.mrf.mxu0 }
 0x1ce   :  { %v1492_v48 = vadd.f32 %v1491_v20, %v1443_v31  ;;  %v1678_v58 = vsel %vm300_vm2, 0.0, %v1646_v46 }
 0x1d0   :  { %v1541_v26 = vadd.f32 %v1540_v62, %v1492_v48 }
 0x1d1   :  { %v1494_v61 = vpop.f32.mrf.mxu3 }
 0x1d2   :  { %v4556_v22 = vmax.f32 %v1541_v26, 0.0 }
 0x1d3   :  { %v1445_v56 = vpop.f32.mrf.mxu2 }
 0x1d4   :  { %v1446_v57 = vadd.f32 %v4479_v40, %v1445_v56  ;;  %v1647_v10 = vrot.slane %v4556_v22, 7  ;;  %v3678_v24 = vpack.i.bf16 %v4556_v22, %v4554_v49 }
 0x1d5   :  { %v1545_v34 = vpop.f32.mrf.mxu0 }
 0x1d6   :  { %v1495_v23 = vadd.f32 %v1494_v61, %v1446_v57  ;;  %3679 = vrot.lane.b32.xlu2 %v3678_v24, %s3900_s26  ;;  %v1679_v55 = vsel %vm300_vm2, 0.0, %v1647_v10 }
 0x1d7   :  { %v1760_v25 = vpack.c.bf16 %v1679_v55, %v1678_v58 }
 0x1d8   :  { %v1544_v28 = vadd.f32 %v1543_v32, %v1495_v23 }
 0x1d9   :  { %v1496_v27 = vpop.f32.mrf.mxu3  ;;  %3481 = vmatmul.msk.bf16.gmra.mxu2 %vm1734_vm5, %v1760_v25  ;;  %v1591_v25 = vrot.slane %v4491_v7, 1 }
 0x1da   :  { %v4571_v38 = vmax.f32 %v1544_v28, 0.0 }
 0x1db   :  { %v1447_v36 = vpop.f32.mrf.mxu2 }
 0x1dc   :  { %v1448_v14 = vadd.f32 %v4479_v40, %v1447_v36  ;;  %v1648_v63 = vrot.slane %v4571_v38, 7 }
 0x1dd   :  { %v1548_v35 = vpop.f32.mrf.mxu0 }
 0x1de   :  { %v1497_v47 = vadd.f32 %v1496_v27, %v1448_v14  ;;  %v1680_v3 = vsel %vm300_vm2, 0.0, %v1648_v63  ;;  %v1590_v27 = vrot.slane %v4486_v44, 1 }
 0x1e0   :  { %v1546_v50 = vadd.f32 %v1545_v34, %v1497_v47 }
 0x1e1   :  { %v1499_v51 = vpop.f32.mrf.mxu3 }
 0x1e2   :  { %v4574_v37 = vmax.f32 %v1546_v50, 0.0 }
 0x1e3   :  { %v1450_v52 = vpop.f32.mrf.mxu2 }
 0x1e4   :  { %v1649_v53 = vrot.slane %v4574_v37, 7  ;;  %v1451_v41 = vadd.f32 %v4479_v40, %v1450_v52  ;;  %v3683_v42 = vpack.i.bf16 %v4574_v37, %v4571_v38  ;;  %v1592_v52 = vrot.slane %v4503_v30, 1 }
 0x1e5   :  { %v1550_v5 = vpop.f32.mrf.mxu0 }
 0x1e6   :  { %v1500_v2 = vadd.f32 %v1499_v51, %v1451_v41  ;;  %3684 = vrot.lane.b32.xlu2 %v3683_v42, %s3900_s26  ;;  %v1681_v16 = vsel %vm300_vm2, 0.0, %v1649_v53  ;;  %v1622_v51 = vsel %vm203_vm0, %v1590_v27, 0.0  ;;  %v1593_v53 = vrot.slane %v4509_v45, 1 }
 0x1e7   :  { %v1762_v54 = vpack.c.bf16 %v1681_v16, %v1680_v3 }
 0x1e8   :  { %v1549_v4 = vadd.f32 %v1548_v35, %v1500_v2  ;;  %v1623_v35 = vsel %vm203_vm0, %v1591_v25, 0.0  ;;  %v1624_v2 = vsel %vm203_vm0, %v1592_v52, 0.0  ;;  %v1625_v3 = vsel %vm203_vm0, %v1593_v53, 0.0 }
 0x1e9   :  { %v1501_v17 = vpop.f32.mrf.mxu3  ;;  %3482 = vmatmul.msk.bf16.gmra.mxu2 %vm1734_vm5, %v1762_v54 }
 0x1ea   :  { %v4588_v8 = vmax.f32 %v1549_v4, 0.0  ;;  %v1595_v4 = vrot.slane %v4525_v39, 1 }
 0x1eb   :  { %v1452_v6 = vpop.f32.mrf.mxu2 }
 0x1ec   :  { %v1453_v19 = vadd.f32 %v4479_v40, %v1452_v6  ;;  %v1650_v9 = vrot.slane %v4588_v8, 7 }
 0x1ed   :  { %v1553_v21 = vpop.f32.mrf.mxu0 }
 0x1ee   :  { %v1502_v59 = vadd.f32 %v1501_v17, %v1453_v19  ;;  %v1682_v31 = vsel %vm300_vm2, 0.0, %v1650_v9 }
 0x1f0   :  { %v1551_v60 = vadd.f32 %v1550_v5, %v1502_v59  ;;  %v1594_v5 = vrot.slane %v4520_v33, 1  ;;  %v1627_v59 = vsel %vm203_vm0, %v1595_v4, 0.0 }
 0x1f1   :  { %v1504_v18 = vpop.f32.mrf.mxu3 }
 0x1f2   :  { %v4591_v62 = vmax.f32 %v1551_v60, 0.0  ;;  %v1626_v19 = vsel %vm203_vm0, %v1594_v5, 0.0 }
 0x1f3   :  { %v1455_v11 = vpop.f32.mrf.mxu2 }
 0x1f4   :  { %v1651_v12 = vrot.slane %v4591_v62, 7  ;;  %v1456_v1 = vadd.f32 %v4479_v40, %v1455_v11  ;;  %v3688_v20 = vpack.i.bf16 %v4591_v62, %v4588_v8  ;;  %v1599_v11 = vrot.slane %v4556_v22, 1 }
 0x1f5   :  { %v1555_v24 = vpop.f32.mrf.mxu0 }
 0x1f6   :  { %v1505_v15 = vadd.f32 %v1504_v18, %v1456_v1  ;;  %3689 = vrot.lane.b32.xlu0 %v3688_v20, %s3900_s26  ;;  %v1683_v32 = vsel %vm300_vm2, 0.0, %v1651_v12  ;;  %v1598_v12 = vrot.slane %v4554_v49, 1 }
 0x1f7   :  { %v1764_v48 = vpack.c.bf16 %v1683_v32, %v1682_v31 }
 0x1f8   :  { %v1554_v26 = vadd.f32 %v1553_v21, %v1505_v15  ;;  %v1630_v20 = vsel %vm203_vm0, %v1598_v12, 0.0  ;;  %v1631_v21 = vsel %vm203_vm0, %v1599_v11, 0.0 }
 0x1f9   :  { %3483 = vmatmul.msk.bf16.gmra.mxu2 %vm1734_vm5, %v1764_v48  ;;  %v1506_v56 = vpop.f32.mrf.mxu3  ;;  %v1596_v48 = vrot.slane %v4537_v0, 1 }
 0x1fa   :  { %v4602_v57 = vmax.f32 %v1554_v26, 0.0  ;;  %v1597_v26 = vrot.slane %v4540_v13, 1 }
 0x1fb   :  { %v1457_v61 = vpop.f32.mrf.mxu2 }
 0x1fc   :  { %v1458_v46 = vadd.f32 %v4479_v40, %v1457_v61  ;;  %v1652_v23 = vrot.slane %v4602_v57, 7  ;;  %v1604_v53 = vrot.slane %v4602_v57, 1 }
 0x1fe   :  { %v1507_v10 = vadd.f32 %v1506_v56, %v1458_v46  ;;  %v1684_v40 = vsel %vm300_vm2, 0.0, %v1652_v23  ;;  %v1628_v46 = vsel %vm203_vm0, %v1596_v48, 0.0  ;;  %v1629_v56 = vsel %vm203_vm0, %v1597_v26, 0.0 }
 0x1ff   :  { %v1600_v23 = vrot.slane %v4571_v38, 1  ;;  %v1603_v38 = vrot.slane %v4591_v62, 1 }
 0x200   :  { %v1556_v29 = vadd.f32 %v1555_v24, %v1507_v10 }
 0x201   :  { %v1632_v25 = vsel %vm203_vm0, %v1600_v23, 0.0 }
 0x202   :  { %v4605_v58 = vmax.f32 %v1556_v29, 0.0 }
 0x204   :  { %v1653_v55 = vrot.slane %v4605_v58, 7  ;;  %v3693_v34 = vpack.i.bf16 %v4605_v58, %v4602_v57 }
 0x206   :  { %3694 = vrot.lane.b32.xlu1 %v3693_v34, %s3900_s26  ;;  %v1685_v28 = vsel %vm300_vm2, 0.0, %v1653_v55  ;;  %v1601_v55 = vrot.slane %v4574_v37, 1 }
 0x207   :  { %v1766_v36 = vpack.c.bf16 %v1685_v28, %v1684_v40 }
 0x208   :  { %v3660_v14 = vpop.permute.xlu0 %3659  ;;  %v1633_v27 = vsel %vm203_vm0, %v1601_v55, 0.0 }
 0x209   :  { %v3662_v47 = vunpack.i.h.bf16 %v3660_v14  ;;  %v3661_v50 = vunpack.i.l.bf16 %v3660_v14  ;;  %3484 = vmatmul.msk.bf16.gmra.mxu2 %vm1734_vm5, %v1766_v36  ;;  %v1602_v14 = vrot.slane %v4588_v8, 1  ;;  %v1605_v8 = vrot.slane %v4605_v58, 1  ;;  %v4668_v58 = vld [vmem:[%s5117_s6] ss:$0 sm:$0xff]  ;;  %s3902_s6 = smov 32  }
 0x20b   :  { %v1736_v7 = vsel %vm1734_vm5, %v1623_v35, %v3662_v47  ;;  %v1735_v44 = vsel %vm1734_vm5, %v1622_v51, %v3661_v50  ;;  %v1634_v35 = vsel %vm203_vm0, %v1602_v14, 0.0  ;;  %v1635_v51 = vsel %vm203_vm0, %v1603_v38, 0.0 }
 0x20c   :  { %v1751_v63 = vpack.c.bf16 %v1736_v7, %v1735_v44 }
 0x20e   :  { %1899 = vmatmul.bf16.vlgmr.msra.gmra.mxu1 %v1751_v63 }
 0x218   :  { %v3665_v41 = vpop.permute.xlu0 %3664 }
 0x219   :  { %v3667_v42 = vunpack.i.h.bf16 %v3665_v41  ;;  %v3666_v43 = vunpack.i.l.bf16 %v3665_v41 }
 0x21b   :  { %v1737_v16 = vsel %vm1734_vm5, %v1624_v2, %v3666_v43  ;;  %v1738_v54 = vsel %vm1734_vm5, %v1625_v3, %v3667_v42  ;;  %v1636_v2 = vsel %vm203_vm0, %v1604_v53, 0.0  ;;  %v1637_v3 = vsel %vm203_vm0, %v1605_v8, 0.0 }
 0x21c   :  { %v1753_v17 = vpack.c.bf16 %v1738_v54, %v1737_v16  ;;  %v1949_v52 = vpop.f32.mrf.mxu2  ;;  %v3630_v16 = vld [vmem:[%s5118_s7 + $0x28] sm:$0xff] }
 0x21d   :  { %2349 = vmatpush.bf16.msrb.mxu3 %v3630_v16 }
 0x21e   :  { %1904 = vmatmul.bf16.gmra.mxu1 %v1753_v17 }
 0x224   :  { %v1951_v62 = vpop.f32.mrf.mxu2 }
 0x228   :  { %v3670_v30 = vpop.permute.xlu1 %3669 }
 0x229   :  { %v3672_v6 = vunpack.i.h.bf16 %v3670_v30  ;;  %v3671_v45 = vunpack.i.l.bf16 %v3670_v30 }
 0x22b   :  { %v1739_v60 = vsel %vm1734_vm5, %v1626_v19, %v3671_v45  ;;  %v1740_v9 = vsel %vm1734_vm5, %v1627_v59, %v3672_v6  ;;  %v3629_v19 = vld [vmem:[%s5118_s7 + $0x20] sm:$0xff] }
 0x22c   :  { %v1755_v18 = vpack.c.bf16 %v1740_v9, %v1739_v60  ;;  %v1954_v57 = vpop.f32.mrf.mxu2  ;;  %2350 = vmatpush.bf16.msrb.mxu3 %v3629_v19 }
 0x22e   :  { %1909 = vmatmul.bf16.gmra.mxu1 %v1755_v18 }
 0x230   :  { %v3680_v39 = vpop.permute.xlu2 %3679 }
 0x231   :  { %v3682_v1 = vunpack.i.h.bf16 %v3680_v39  ;;  %v3681_v33 = vunpack.i.l.bf16 %v3680_v39 }
 0x233   :  { %v1743_v15 = vsel %vm1734_vm5, %v1630_v20, %v3681_v33  ;;  %v1744_v31 = vsel %vm1734_vm5, %v1631_v21, %v3682_v1 }
 0x234   :  { %v1759_v32 = vpack.c.bf16 %v1744_v31, %v1743_v15  ;;  %v1956_v6 = vpop.f32.mrf.mxu2 }
 0x238   :  { %v3675_v22 = vpop.permute.xlu1 %3674 }
 0x239   :  { %v3677_v61 = vunpack.i.h.bf16 %v3675_v22  ;;  %v3676_v49 = vunpack.i.l.bf16 %v3675_v22  ;;  %v3628_v22 = vld [vmem:[%s5118_s7 + $0x18] sm:$0xff] }
 0x23a   :  { %2351 = vmatpush.bf16.msrb.mxu3 %v3628_v22 }
 0x23b   :  { %v1741_v10 = vsel %vm1734_vm5, %v1628_v46, %v3676_v49  ;;  %v1742_v24 = vsel %vm1734_vm5, %v1629_v56, %v3677_v61 }
 0x23c   :  { %v1757_v29 = vpack.c.bf16 %v1742_v24, %v1741_v10  ;;  %v1959_v11 = vpop.f32.mrf.mxu2 }
 0x23e   :  { %1914 = vmatmul.bf16.gmra.mxu1 %v1757_v29 }
 0x240   :  { %v3685_v0 = vpop.permute.xlu2 %3684 }
 0x241   :  { %v3687_v34 = vunpack.i.h.bf16 %v3685_v0  ;;  %v3686_v13 = vunpack.i.l.bf16 %v3685_v0 }
 0x243   :  { %v1745_v40 = vsel %vm1734_vm5, %v1632_v25, %v3686_v13  ;;  %v1746_v28 = vsel %vm1734_vm5, %v1633_v27, %v3687_v34 }
 0x244   :  { %v1761_v36 = vpack.c.bf16 %v1746_v28, %v1745_v40  ;;  %v1961_v26 = vpop.f32.mrf.mxu2 }
 0x24c   :  { %v1964_v55 = vpop.f32.mrf.mxu2 }
 0x24e   :  { %1919 = vmatmul.bf16.gmra.mxu1 %v1759_v32 }
 0x254   :  { %v1966_v38 = vpop.f32.mrf.mxu2 }
 0x25e   :  { %1924 = vmatmul.bf16.gmra.mxu1 %v1761_v36 }
 0x268   :  { %v3690_v47 = vpop.permute.xlu0 %3689 }
 0x269   :  { %v3692_v37 = vunpack.i.h.bf16 %v3690_v47  ;;  %v3691_v50 = vunpack.i.l.bf16 %v3690_v47 }
 0x26b   :  { %v1747_v7 = vsel %vm1734_vm5, %v1634_v35, %v3691_v50  ;;  %v1748_v44 = vsel %vm1734_vm5, %v1635_v51, %v3692_v37 }
 0x26c   :  { %v1763_v63 = vpack.c.bf16 %v1748_v44, %v1747_v7  ;;  %v3627_v7 = vld [vmem:[%s5118_s7 + $0x10] sm:$0xff] }
 0x26d   :  { %2352 = vmatpush.bf16.msrb.mxu3 %v3627_v7 }
 0x26e   :  { %1929 = vmatmul.bf16.gmra.mxu1 %v1763_v63 }
 0x278   :  { %v3695_v41 = vpop.permute.xlu1 %3694 }
 0x279   :  { %v3697_v42 = vunpack.i.h.bf16 %v3695_v41  ;;  %v3696_v43 = vunpack.i.l.bf16 %v3695_v41  ;;  %v1969_v41 = vpop.f32.mrf.mxu2 }
 0x27b   :  { %v1749_v54 = vsel %vm1734_vm5, %v1636_v2, %v3696_v43  ;;  %v1750_v17 = vsel %vm1734_vm5, %v1637_v3, %v3697_v42 }
 0x27c   :  { %v1765_v4 = vpack.c.bf16 %v1750_v17, %v1749_v54 }
 0x27e   :  { %1934 = vmatmul.bf16.gmra.mxu1 %v1765_v4 }
 0x281   :  { %v1971_v17 = vpop.f32.mrf.mxu2 }
 0x28b   :  { %v1900_v5 = vpop.f32.mrf.mxu1 }
 0x28c   :  { %v1901_v30 = vadd.f32 %v4668_v58, %v1900_v5 }
 0x28e   :  { %v1950_v45 = vadd.f32 %v1949_v52, %v1901_v30 }
 0x290   :  { %v4674_v60 = vmax.f32 %v1950_v45, 0.0 }
 0x292   :  { %v2069_v39 = vrot.slane %v4674_v60, 7 }
 0x293   :  { %v1902_v59 = vpop.f32.mrf.mxu1 }
 0x294   :  { %v1903_v9 = vadd.f32 %v4668_v58, %v1902_v59  ;;  %v2101_v15 = vsel %vm300_vm2, 0.0, %v2069_v39 }
 0x296   :  { %v1952_v18 = vadd.f32 %v1951_v62, %v1903_v9  ;;  %v3626_v9 = vld [vmem:[%s5118_s7 + $0x8] sm:$0xff] }
 0x297   :  { %2353 = vmatpush.bf16.msrb.mxu3 %v3626_v9 }
 0x298   :  { %v4677_v12 = vmax.f32 %v1952_v18, 0.0  ;;  %v1974_v18 = vpop.f32.mrf.mxu2 }
 0x29a   :  { %v3698_v1 = vpack.i.bf16 %v4677_v12, %v4674_v60  ;;  %v2070_v33 = vrot.slane %v4677_v12, 7 }
 0x29b   :  { %v1905_v20 = vpop.f32.mrf.mxu1 }
 0x29c   :  { %v1906_v21 = vadd.f32 %v4668_v58, %v1905_v20  ;;  %3699 = vrot.lane.b32.xlu2 %v3698_v1, %s3902_s6  ;;  %v2102_v31 = vsel %vm300_vm2, 0.0, %v2070_v33 }
 0x29d   :  { %v3703_v32 = vpack.i.bf16 %v2102_v31, %v2101_v15 }
 0x29e   :  { %v1955_v48 = vadd.f32 %v1954_v57, %v1906_v21 }
 0x29f   :  { %3704 = vrot.lane.b32.xlu0 %v3703_v32, %s3900_s26 }
 0x2a0   :  { %v4691_v49 = vmax.f32 %v1955_v48, 0.0 }
 0x2a2   :  { %v2071_v24 = vrot.slane %v4691_v49, 7 }
 0x2a3   :  { %v1907_v61 = vpop.f32.mrf.mxu1 }
 0x2a4   :  { %v1908_v46 = vadd.f32 %v4668_v58, %v1907_v61  ;;  %v2103_v13 = vsel %vm300_vm2, 0.0, %v2071_v24  ;;  %v1976_v61 = vpop.f32.mrf.mxu2  ;;  %v3625_v24 = vld [vmem:[%s5118_s7] sm:$0xff] }
 0x2a5   :  { %2354 = vmatpush.bf16.msrb.mxu3 %v3625_v24 }
 0x2a6   :  { %v1957_v56 = vadd.f32 %v1956_v6, %v1908_v46 }
 0x2a8   :  { %v4694_v10 = vmax.f32 %v1957_v56, 0.0 }
 0x2aa   :  { %v3708_v29 = vpack.i.bf16 %v4694_v10, %v4691_v49  ;;  %v2072_v23 = vrot.slane %v4694_v10, 7 }
 0x2ab   :  { %v1910_v0 = vpop.f32.mrf.mxu1 }
 0x2ac   :  { %v1911_v34 = vadd.f32 %v4668_v58, %v1910_v0  ;;  %3709 = vrot.lane.b32.xlu1 %v3708_v29, %s3902_s6  ;;  %v2104_v25 = vsel %vm300_vm2, 0.0, %v2072_v23 }
 0x2ad   :  { %v3713_v27 = vpack.i.bf16 %v2104_v25, %v2103_v13 }
 0x2ae   :  { %v1960_v40 = vadd.f32 %v1959_v11, %v1911_v34  ;;  %v1979_v34 = vpop.f32.mrf.mxu2 }
 0x2af   :  { %3714 = vrot.lane.b32.xlu2 %v3713_v27, %s3900_s26 }
 0x2b0   :  { %v4705_v36 = vmax.f32 %v1960_v40, 0.0 }
 0x2b2   :  { %v2073_v50 = vrot.slane %v4705_v36, 7 }
 0x2b3   :  { %v1912_v28 = vpop.f32.mrf.mxu1 }
 0x2b4   :  { %v1913_v14 = vadd.f32 %v4668_v58, %v1912_v28  ;;  %v2105_v52 = vsel %vm300_vm2, 0.0, %v2073_v50 }
 0x2b6   :  { %v1962_v47 = vadd.f32 %v1961_v26, %v1913_v14 }
 0x2b8   :  { %v4708_v37 = vmax.f32 %v1962_v47, 0.0 }
 0x2ba   :  { %v3718_v35 = vpack.i.bf16 %v4708_v37, %v4705_v36  ;;  %v2074_v51 = vrot.slane %v4708_v37, 7 }
 0x2bb   :  { %v1915_v44 = vpop.f32.mrf.mxu1 }
 0x2bc   :  { %v1916_v63 = vadd.f32 %v4668_v58, %v1915_v44  ;;  %3719 = vrot.lane.b32.xlu0 %v3718_v35, %s3902_s6  ;;  %v2106_v53 = vsel %vm300_vm2, 0.0, %v2074_v51  ;;  %v1981_v51 = vpop.f32.mrf.mxu2 }
 0x2bd   :  { %v3723_v8 = vpack.i.bf16 %v2106_v53, %v2105_v52 }
 0x2be   :  { %v1965_v62 = vadd.f32 %v1964_v55, %v1916_v63 }
 0x2bf   :  { %3724 = vrot.lane.b32.xlu1 %v3723_v8, %s3900_s26 }
 0x2c0   :  { %v4722_v43 = vmax.f32 %v1965_v62, 0.0 }
 0x2c2   :  { %v2075_v54 = vrot.slane %v4722_v43, 7 }
 0x2c3   :  { %v1917_v42 = vpop.f32.mrf.mxu1 }
 0x2c4   :  { %v1918_v2 = vadd.f32 %v4668_v58, %v1917_v42  ;;  %v2107_v6 = vsel %vm300_vm2, 0.0, %v2075_v54  ;;  %v1984_v42 = vpop.f32.mrf.mxu2 }
 0x2c6   :  { %v1967_v3 = vadd.f32 %v1966_v38, %v1918_v2 }
 0x2c8   :  { %v4725_v16 = vmax.f32 %v1967_v3, 0.0 }
 0x2ca   :  { %v3728_v4 = vpack.i.bf16 %v4725_v16, %v4722_v43  ;;  %v2076_v57 = vrot.slane %v4725_v16, 7 }
 0x2cb   :  { %v1920_v5 = vpop.f32.mrf.mxu1 }
 0x2cc   :  { %v1921_v30 = vadd.f32 %v4668_v58, %v1920_v5  ;;  %3729 = vrot.lane.b32.xlu2 %v3728_v4, %s3902_s6  ;;  %v2108_v45 = vsel %vm300_vm2, 0.0, %v2076_v57 }
 0x2cd   :  { %v3733_v19 = vpack.i.bf16 %v2108_v45, %v2107_v6  ;;  %v1986_v6 = vpop.f32.mrf.mxu2 }
 0x2ce   :  { %v1970_v59 = vadd.f32 %v1969_v41, %v1921_v30 }
 0x2cf   :  { %3734 = vrot.lane.b32.xlu0 %v3733_v19, %s3900_s26 }
 0x2d0   :  { %v4739_v39 = vmax.f32 %v1970_v59, 0.0 }
 0x2d2   :  { %v2077_v21 = vrot.slane %v4739_v39, 7 }
 0x2d3   :  { %v1922_v11 = vpop.f32.mrf.mxu1 }
 0x2d4   :  { %v1923_v1 = vadd.f32 %v4668_v58, %v1922_v11  ;;  %v2109_v26 = vsel %vm300_vm2, 0.0, %v2077_v21  ;;  %v2021_v21 = vrot.slane %v4674_v60, 1 }
 0x2d6   :  { %v1972_v33 = vadd.f32 %v1971_v17, %v1923_v1 }
 0x2d8   :  { %v4742_v20 = vmax.f32 %v1972_v33, 0.0 }
 0x2da   :  { %v3738_v15 = vpack.i.bf16 %v4742_v20, %v4739_v39  ;;  %v2078_v31 = vrot.slane %v4742_v20, 7 }
 0x2db   :  { %v1925_v32 = vpop.f32.mrf.mxu1 }
 0x2dc   :  { %v1926_v48 = vadd.f32 %v4668_v58, %v1925_v32  ;;  %3739 = vrot.lane.b32.xlu1 %v3738_v15, %s3902_s6  ;;  %v2110_v22 = vsel %vm300_vm2, 0.0, %v2078_v31  ;;  %v2022_v15 = vrot.slane %v4677_v12, 1 }
 0x2dd   :  { %v3743_v46 = vpack.i.bf16 %v2110_v22, %v2109_v26 }
 0x2de   :  { %v1975_v56 = vadd.f32 %v1974_v18, %v1926_v48  ;;  %v2054_v22 = vsel %vm203_vm0, %v2022_v15, 0.0 }
 0x2df   :  { %3744 = vrot.lane.b32.xlu2 %v3743_v46, %s3900_s26 }
 0x2e0   :  { %v4756_v23 = vmax.f32 %v1975_v56, 0.0 }
 0x2e2   :  { %v2079_v25 = vrot.slane %v4756_v23, 7 }
 0x2e3   :  { %v1927_v29 = vpop.f32.mrf.mxu1 }
 0x2e4   :  { %v1928_v55 = vadd.f32 %v4668_v58, %v1927_v29  ;;  %v2111_v38 = vsel %vm300_vm2, 0.0, %v2079_v25 }
 0x2e6   :  { %v1977_v0 = vadd.f32 %v1976_v61, %v1928_v55  ;;  %v2053_v61 = vsel %vm203_vm0, %v2021_v21, 0.0 }
 0x2e8   :  { %v4759_v13 = vmax.f32 %v1977_v0, 0.0  ;;  %v2023_v0 = vrot.slane %v4691_v49, 1 }
 0x2ea   :  { %v3748_v27 = vpack.i.bf16 %v4759_v13, %v4756_v23  ;;  %v2080_v40 = vrot.slane %v4759_v13, 7 }
 0x2eb   :  { %v1930_v28 = vpop.f32.mrf.mxu1 }
 0x2ec   :  { %v1931_v14 = vadd.f32 %v4668_v58, %v1930_v28  ;;  %3749 = vrot.lane.b32.xlu0 %v3748_v27, %s3902_s6  ;;  %v2112_v47 = vsel %vm300_vm2, 0.0, %v2080_v40 }
 0x2ed   :  { %v3753_v50 = vpack.i.bf16 %v2112_v47, %v2111_v38 }
 0x2ee   :  { %v1980_v35 = vadd.f32 %v1979_v34, %v1931_v14  ;;  %v2024_v34 = vrot.slane %v4694_v10, 1  ;;  %v2025_v10 = vrot.slane %v4705_v36, 1 }
 0x2ef   :  { %3754 = vrot.lane.b32.xlu1 %v3753_v50, %s3900_s26  ;;  %v2055_v50 = vsel %vm203_vm0, %v2023_v0, 0.0 }
 0x2f0   :  { %v4770_v44 = vmax.f32 %v1980_v35, 0.0  ;;  %v2056_v47 = vsel %vm203_vm0, %v2024_v34, 0.0 }
 0x2f2   :  { %v2081_v8 = vrot.slane %v4770_v44, 7 }
 0x2f3   :  { %v1932_v7 = vpop.f32.mrf.mxu1 }
 0x2f4   :  { %v1933_v63 = vadd.f32 %v4668_v58, %v1932_v7  ;;  %v2113_v3 = vsel %vm300_vm2, 0.0, %v2081_v8 }
 0x2f6   :  { %v1982_v52 = vadd.f32 %v1981_v51, %v1933_v63  ;;  %v3700_v1 = vpop.permute.xlu2 %3699 }
 0x2f7   :  { %v3702_v32 = vunpack.i.h.bf16 %v3700_v1  ;;  %v3701_v48 = vunpack.i.l.bf16 %v3700_v1 }
 0x2f8   :  { %v4773_v53 = vmax.f32 %v1982_v52, 0.0  ;;  %v2026_v52 = vrot.slane %v4708_v37, 1 }
 0x2f9   :  { %v2231_v24 = vsel %vm2229_vm6, %v2054_v22, %v3702_v32  ;;  %v2230_v29 = vsel %vm2229_vm6, %v2053_v61, %v3701_v48 }
 0x2fa   :  { %v3758_v41 = vpack.i.bf16 %v4773_v53, %v4770_v44  ;;  %v2082_v62 = vrot.slane %v4773_v53, 7 }
 0x2fb   :  { %v1935_v2 = vpop.f32.mrf.mxu1 }
 0x2fc   :  { %3759 = vrot.lane.b32.xlu2 %v3758_v41, %s3902_s6  ;;  %v2114_v54 = vsel %vm300_vm2, 0.0, %v2082_v62  ;;  %v1936_v17 = vadd.f32 %v4668_v58, %v1935_v2  ;;  %v2057_v2 = vsel %vm203_vm0, %v2025_v10, 0.0 }
 0x2fd   :  { %v3763_v4 = vpack.i.bf16 %v2114_v54, %v2113_v3  ;;  %v2058_v3 = vsel %vm203_vm0, %v2026_v52, 0.0  ;;  %v2033_v52 = vrot.slane %v4770_v44, 1 }
 0x2fe   :  { %v1985_v57 = vadd.f32 %v1984_v42, %v1936_v17 }
 0x2ff   :  { %3764 = vrot.lane.b32.xlu0 %v3763_v4, %s3900_s26 }
 0x300   :  { %v4785_v45 = vmax.f32 %v1985_v57, 0.0 }
 0x302   :  { %v2083_v9 = vrot.slane %v4785_v45, 7 }
 0x303   :  { %v1937_v5 = vpop.f32.mrf.mxu1 }
 0x304   :  { %v1938_v30 = vadd.f32 %v4668_v58, %v1937_v5  ;;  %v2115_v33 = vsel %vm300_vm2, 0.0, %v2083_v9 }
 0x306   :  { %v1987_v19 = vadd.f32 %v1986_v6, %v1938_v30  ;;  %v2027_v6 = vrot.slane %v4722_v43, 1 }
 0x308   :  { %v4787_v59 = vmax.f32 %v1987_v19, 0.0  ;;  %v2028_v19 = vrot.slane %v4725_v16, 1  ;;  %v2059_v1 = vsel %vm203_vm0, %v2027_v6, 0.0  ;;  %v2029_v16 = vrot.slane %v4739_v39, 1 }
 0x309   :  { %v3715_v25 = vpop.permute.xlu2 %3714 }
 0x30a   :  { %v3768_v18 = vpack.i.bf16 %v4787_v59, %v4785_v45  ;;  %v2084_v11 = vrot.slane %v4787_v59, 7  ;;  %v3717_v14 = vunpack.i.h.bf16 %v3715_v25  ;;  %v3716_v38 = vunpack.i.l.bf16 %v3715_v25 }
 0x30c   :  { %3769 = vrot.lane.b32.xlu1 %v3768_v18, %s3902_s6  ;;  %v2116_v58 = vsel %vm300_vm2, 0.0, %v2084_v11 }
 0x30d   :  { %v3773_v31 = vpack.i.bf16 %v2116_v58, %v2115_v33  ;;  %v2060_v33 = vsel %vm203_vm0, %v2028_v19, 0.0 }
 0x30f   :  { %3774 = vrot.lane.b32.xlu2 %v3773_v31, %s3900_s26 }
 0x311   :  { %v3705_v26 = vpop.permute.xlu0 %3704 }
 0x312   :  { %v3707_v46 = vunpack.i.h.bf16 %v3705_v26  ;;  %v3706_v56 = vunpack.i.l.bf16 %v3705_v26  ;;  %v2030_v26 = vrot.slane %v4742_v20, 1  ;;  %v2031_v20 = vrot.slane %v4756_v23, 1 }
 0x314   :  { %v2247_v60 = vsel %vm1734_vm5, %v2231_v24, %v3707_v46  ;;  %v2246_v12 = vsel %vm1734_vm5, %v2230_v29, %v3706_v56 }
 0x315   :  { %v2262_v55 = vpack.c.bf16 %v2247_v60, %v2246_v12  ;;  %v2061_v60 = vsel %vm203_vm0, %v2029_v16, 0.0  ;;  %v2062_v12 = vsel %vm203_vm0, %v2030_v26, 0.0 }
 0x317   :  { %3509 = vmatmul.msk.bf16.vlgmr.msrb.gmra.mxu3 %vm2322_vm7, %v2262_v55 }
 0x31e   :  { %v3710_v27 = vpop.permute.xlu1 %3709 }
 0x31f   :  { %v3712_v40 = vunpack.i.h.bf16 %v3710_v27  ;;  %v3711_v28 = vunpack.i.l.bf16 %v3710_v27  ;;  %v2032_v27 = vrot.slane %v4759_v13, 1 }
 0x321   :  { %v2233_v35 = vsel %vm2229_vm6, %v2056_v47, %v3712_v40  ;;  %v2232_v51 = vsel %vm2229_vm6, %v2055_v50, %v3711_v28  ;;  %v2063_v47 = vsel %vm203_vm0, %v2031_v20, 0.0  ;;  %v2064_v50 = vsel %vm203_vm0, %v2032_v27, 0.0 }
 0x322   :  { %v2248_v7 = vsel %vm1734_vm5, %v2232_v51, %v3716_v38  ;;  %v2249_v49 = vsel %vm1734_vm5, %v2233_v35, %v3717_v14 }
 0x323   :  { %v2263_v63 = vpack.c.bf16 %v2249_v49, %v2248_v7 }
 0x326   :  { %v3730_v37 = vpop.permute.xlu2 %3729 }
 0x327   :  { %3510 = vmatmul.msk.bf16.gmra.mxu3 %vm2322_vm7, %v2263_v63  ;;  %v3732_v9 = vunpack.i.h.bf16 %v3730_v37  ;;  %v3731_v18 = vunpack.i.l.bf16 %v3730_v37 }
 0x329   :  { %v2237_v15 = vsel %vm2229_vm6, %v2060_v33, %v3732_v9  ;;  %v2236_v31 = vsel %vm2229_vm6, %v2059_v1, %v3731_v18 }
 0x32e   :  { %v3720_v8 = vpop.permute.xlu0 %3719 }
 0x32f   :  { %v3722_v41 = vunpack.i.h.bf16 %v3720_v8  ;;  %v3721_v62 = vunpack.i.l.bf16 %v3720_v8  ;;  %v2034_v8 = vrot.slane %v4773_v53, 1  ;;  %v2035_v53 = vrot.slane %v4785_v45, 1 }
 0x331   :  { %v3725_v42 = vpop.permute.xlu1 %3724  ;;  %v2235_v4 = vsel %vm2229_vm6, %v2058_v3, %v3722_v41  ;;  %v2234_v57 = vsel %vm2229_vm6, %v2057_v2, %v3721_v62  ;;  %v2065_v2 = vsel %vm203_vm0, %v2033_v52, 0.0  ;;  %v2066_v3 = vsel %vm203_vm0, %v2034_v8, 0.0 }
 0x332   :  { %v3727_v54 = vunpack.i.h.bf16 %v3725_v42  ;;  %v3726_v17 = vunpack.i.l.bf16 %v3725_v42  ;;  %v2067_v1 = vsel %vm203_vm0, %v2035_v53, 0.0 }
 0x334   :  { %v2250_v5 = vsel %vm1734_vm5, %v2234_v57, %v3726_v17  ;;  %v2251_v36 = vsel %vm1734_vm5, %v2235_v4, %v3727_v54 }
 0x335   :  { %v2264_v30 = vpack.c.bf16 %v2251_v36, %v2250_v5 }
 0x337   :  { %3511 = vmatmul.msk.bf16.gmra.mxu3 %vm2322_vm7, %v2264_v30  ;;  %v2036_v30 = vrot.slane %v4787_v59, 1  ;;  %v2722_v59 = vld [vmem:[%s5121_s10 + $0x8] sm:$0x1] }
 0x339   :  { %v3745_v22 = vpop.permute.xlu2 %3744  ;;  %v2068_v33 = vsel %vm203_vm0, %v2036_v30, 0.0 }
 0x33a   :  { %v3747_v24 = vunpack.i.h.bf16 %v3745_v22  ;;  %v3746_v29 = vunpack.i.l.bf16 %v3745_v22  ;;  %v3903_v22 = vmov 65535  }
 0x341   :  { %v3735_v11 = vpop.permute.xlu0 %3734 }
 0x342   :  { %v3737_v58 = vunpack.i.h.bf16 %v3735_v11  ;;  %v3736_v21 = vunpack.i.l.bf16 %v3735_v11 }
 0x344   :  { %v2253_v32 = vsel %vm1734_vm5, %v2237_v15, %v3737_v58  ;;  %v2252_v48 = vsel %vm1734_vm5, %v2236_v31, %v3736_v21 }
 0x345   :  { %v2265_v43 = vpack.c.bf16 %v2253_v32, %v2252_v48  ;;  %v2728_v32 = vunpack.c.l.b16 %v2722_v59  ;;  %v3519_v48 = vld [vmem:[%s5120_s9] sm:$0xf] }
 0x347   :  { %3512 = vmatmul.msk.bf16.gmra.mxu3 %vm2322_vm7, %v2265_v43  ;;  %v3631_v43 = vld [vmem:[%s5120_s9] sm:$0x10]  ;;  %v2730_v16 = vpack.c.b16 %v2728_v32, %v2728_v32 }
 0x348   :  { %v3520_v26 = vor.u32 %v3631_v43, %v3519_v48 }
 0x34e   :  { %v3740_v61 = vpop.permute.xlu1 %3739 }
 0x34f   :  { %v3742_v46 = vunpack.i.h.bf16 %v3740_v61  ;;  %v3741_v56 = vunpack.i.l.bf16 %v3740_v61  ;;  %v2586_v61 = vsel %vm2584_vm8, 4294967295, %v3903_v22 }
 0x351   :  { %v2239_v55 = vsel %vm2229_vm6, %v2062_v12, %v3742_v46  ;;  %v2238_v0 = vsel %vm2229_vm6, %v2061_v60, %v3741_v56  ;;  %v2587_v46 = vsel %vm2585_vm9, %v2586_v61, 0  ;;  %v2750_v56 = vsel %vm300_vm2, %v2730_v16, 0 }
 0x352   :  { %v2254_v34 = vsel %vm1734_vm5, %v2238_v0, %v3746_v29  ;;  %v2255_v39 = vsel %vm1734_vm5, %v2239_v55, %v3747_v24  ;;  %v2589_v24 = vand.u32 %v3520_v26, %v2587_v46  ;;  %2758 = vmatpush.bf16.msrb.mxu1 %v2750_v56  ;;  %v4882_v29 = vld [vmem:[%s5119_s8] ss:$0 sm:$0xff]  ;;  %s3904_s8 = smov 9  }
 0x353   :  { %v2266_v25 = vpack.c.bf16 %v2255_v39, %v2254_v34 }
 0x354   :  { %2598 = vmatpush.bf16.msrb.mxu0 %v2589_v24 }
 0x356   :  { %v3760_v13 = vpop.permute.xlu2 %3759 }
 0x357   :  { %3513 = vmatmul.msk.bf16.gmra.mxu3 %vm2322_vm7, %v2266_v25  ;;  %v3762_v41 = vunpack.i.h.bf16 %v3760_v13  ;;  %v3761_v62 = vunpack.i.l.bf16 %v3760_v13 }
 0x359   :  { %v2243_v4 = vsel %vm2229_vm6, %v2066_v3, %v3762_v41  ;;  %v2242_v57 = vsel %vm2229_vm6, %v2065_v2, %v3761_v62 }
 0x35e   :  { %v3750_v40 = vpop.permute.xlu0 %3749 }
 0x35f   :  { %v3752_v28 = vunpack.i.h.bf16 %v3750_v40  ;;  %v3751_v14 = vunpack.i.l.bf16 %v3750_v40 }
 0x361   :  { %v3755_v38 = vpop.permute.xlu1 %3754  ;;  %v2241_v7 = vsel %vm2229_vm6, %v2064_v50, %v3752_v28  ;;  %v2240_v49 = vsel %vm2229_vm6, %v2063_v47, %v3751_v14 }
 0x362   :  { %v3757_v35 = vunpack.i.h.bf16 %v3755_v38  ;;  %v3756_v51 = vunpack.i.l.bf16 %v3755_v38 }
 0x364   :  { %v2256_v63 = vsel %vm1734_vm5, %v2240_v49, %v3756_v51  ;;  %v2257_v23 = vsel %vm1734_vm5, %v2241_v7, %v3757_v35 }
 0x365   :  { %v2267_v10 = vpack.c.bf16 %v2257_v23, %v2256_v63 }
 0x367   :  { %3514 = vmatmul.msk.bf16.gmra.mxu3 %vm2322_vm7, %v2267_v10 }
 0x369   :  { %v3775_v37 = vpop.permute.xlu2 %3774 }
 0x36a   :  { %v3777_v18 = vunpack.i.h.bf16 %v3775_v37  ;;  %v3776_v11 = vunpack.i.l.bf16 %v3775_v37 }
 0x371   :  { %v3765_v42 = vpop.permute.xlu0 %3764 }
 0x372   :  { %v3767_v54 = vunpack.i.h.bf16 %v3765_v42  ;;  %v3766_v17 = vunpack.i.l.bf16 %v3765_v42 }
 0x374   :  { %v2259_v5 = vsel %vm1734_vm5, %v2243_v4, %v3767_v54  ;;  %v2258_v36 = vsel %vm1734_vm5, %v2242_v57, %v3766_v17 }
 0x375   :  { %v2268_v44 = vpack.c.bf16 %v2259_v5, %v2258_v36 }
 0x377   :  { %3515 = vmatmul.msk.bf16.gmra.mxu3 %vm2322_vm7, %v2268_v44 }
 0x37e   :  { %v3770_v6 = vpop.permute.xlu1 %3769 }
 0x37f   :  { %v3772_v19 = vunpack.i.h.bf16 %v3770_v6  ;;  %v3771_v9 = vunpack.i.l.bf16 %v3770_v6 }
 0x381   :  { %v2245_v58 = vsel %vm2229_vm6, %v2068_v33, %v3772_v19  ;;  %v2244_v21 = vsel %vm2229_vm6, %v2067_v1, %v3771_v9  ;;  %v3632_v33 = vld [vmem:[%s5121_s10] sm:$0xff] }
 0x382   :  { %v2260_v15 = vsel %vm1734_vm5, %v2244_v21, %v3776_v11  ;;  %v2261_v45 = vsel %vm1734_vm5, %v2245_v58, %v3777_v18  ;;  %2759 = vmatpush.bf16.msrb.mxu1 %v3632_v33 }
 0x383   :  { %v2269_v31 = vpack.c.bf16 %v2261_v45, %v2260_v15 }
 0x387   :  { %3516 = vmatmul.msk.bf16.gmra.mxu3 %vm2322_vm7, %v2269_v31 }
 0x39a   :  { %v2356_v60 = vpop.f32.mrf.mxu3 }
 0x39b   :  { %v2357_v12 = vadd.f32 %v4882_v29, %v2356_v60 }
 0x39d   :  { %v2396_v55 = vmax.f32 %v2357_v12, 0.0 }
 0x39f   :  { %v2428_v0 = vrot.slane %v2396_v55, 1  ;;  %v2476_v20 = vpack.c.bf16 %v2396_v55, %v2396_v55 }
 0x3a1   :  { %v2460_v25 = vsel %vm203_vm0, %v2428_v0, 0.0  ;;  %v2530_v38 = vunpack.c.l.b16 %v2476_v20 }
 0x3a2   :  { %v2358_v34 = vpop.f32.mrf.mxu3  ;;  %v2492_v14 = vpack.c.bf16 %v2460_v25, %v2460_v25 }
 0x3a3   :  { %v2359_v39 = vadd.f32 %v4882_v29, %v2358_v34 }
 0x3a4   :  { %v4889_v63 = vunpack.c.l.b16 %v2492_v14 }
 0x3a5   :  { %v2397_v27 = vmax.f32 %v2359_v39, 0.0 }
 0x3a7   :  { %v2429_v40 = vrot.slane %v2397_v27, 1  ;;  %v2477_v28 = vpack.c.bf16 %v2397_v27, %v2397_v27 }
 0x3a9   :  { %v2461_v47 = vsel %vm203_vm0, %v2429_v40, 0.0  ;;  %v2531_v50 = vunpack.c.l.b16 %v2477_v28 }
 0x3aa   :  { %v2493_v35 = vpack.c.bf16 %v2461_v47, %v2461_v47  ;;  %v2361_v51 = vpop.f32.mrf.mxu3 }
 0x3ab   :  { %v2362_v7 = vadd.f32 %v4882_v29, %v2361_v51  ;;  %v2546_v49 = vpack.c.b16 %v2531_v50, %v2530_v38 }
 0x3ac   :  { %v4891_v23 = vunpack.c.l.b16 %v2493_v35 }
 0x3ad   :  { %v2398_v10 = vmax.f32 %v2362_v7, 0.0  ;;  %2680 = vrot.lane.b32.xlu0 %v2546_v49, %s3904_s8  ;;  %3521 = vmatmul.msk.bf16.vlgmr.msrb.gmra.mxu0 %vm2559_vm10, %v2546_v49 }
 0x3ae   :  { %v2672_v13 = vpack.c.b16 %v4891_v23, %v4889_v63 }
 0x3af   :  { %v2430_v52 = vrot.slane %v2398_v10, 1  ;;  %v2478_v42 = vpack.c.bf16 %v2398_v10, %v2398_v10 }
 0x3b1   :  { %v2462_v62 = vsel %vm203_vm0, %v2430_v52, 0.0  ;;  %v2532_v4 = vunpack.c.l.b16 %v2478_v42 }
 0x3b2   :  { %v2363_v8 = vpop.f32.mrf.mxu3  ;;  %v2494_v17 = vpack.c.bf16 %v2462_v62, %v2462_v62 }
 0x3b3   :  { %v2364_v41 = vadd.f32 %v4882_v29, %v2363_v8 }
 0x3b4   :  { %v4901_v37 = vunpack.c.l.b16 %v2494_v17 }
 0x3b5   :  { %v2399_v2 = vmax.f32 %v2364_v41, 0.0 }
 0x3b7   :  { %v2431_v3 = vrot.slane %v2399_v2, 1  ;;  %v2479_v54 = vpack.c.bf16 %v2399_v2, %v2399_v2 }
 0x3b9   :  { %v2463_v57 = vsel %vm203_vm0, %v2431_v3, 0.0  ;;  %v2533_v5 = vunpack.c.l.b16 %v2479_v54 }
 0x3ba   :  { %v2495_v36 = vpack.c.bf16 %v2463_v57, %v2463_v57  ;;  %v2366_v44 = vpop.f32.mrf.mxu3 }
 0x3bb   :  { %v2367_v53 = vadd.f32 %v4882_v29, %v2366_v44  ;;  %v2547_v30 = vpack.c.b16 %v2533_v5, %v2532_v4 }
 0x3bc   :  { %v4903_v6 = vunpack.c.l.b16 %v2495_v36 }
 0x3bd   :  { %v2400_v19 = vmax.f32 %v2367_v53, 0.0  ;;  %2682 = vrot.lane.b32.xlu1 %v2547_v30, %s3904_s8  ;;  %3522 = vmatmul.msk.bf16.gmra.mxu0 %vm2559_vm10, %v2547_v30 }
 0x3be   :  { %v2673_v9 = vpack.c.b16 %v4903_v6, %v4901_v37 }
 0x3bf   :  { %v2432_v18 = vrot.slane %v2400_v19, 1  ;;  %v2480_v21 = vpack.c.bf16 %v2400_v19, %v2400_v19 }
 0x3c1   :  { %v2464_v58 = vsel %vm203_vm0, %v2432_v18, 0.0  ;;  %v2534_v32 = vunpack.c.l.b16 %v2480_v21 }
 0x3c2   :  { %v2368_v11 = vpop.f32.mrf.mxu3  ;;  %v2496_v59 = vpack.c.bf16 %v2464_v58, %v2464_v58 }
 0x3c3   :  { %v2369_v1 = vadd.f32 %v4882_v29, %v2368_v11 }
 0x3c4   :  { %v4916_v46 = vunpack.c.l.b16 %v2496_v59 }
 0x3c5   :  { %v2401_v15 = vmax.f32 %v2369_v1, 0.0 }
 0x3c7   :  { %v2433_v45 = vrot.slane %v2401_v15, 1  ;;  %v2481_v31 = vpack.c.bf16 %v2401_v15, %v2401_v15 }
 0x3c9   :  { %v2465_v48 = vsel %vm203_vm0, %v2433_v45, 0.0  ;;  %v2535_v43 = vunpack.c.l.b16 %v2481_v31 }
 0x3ca   :  { %v2497_v16 = vpack.c.bf16 %v2465_v48, %v2465_v48  ;;  %v2371_v26 = vpop.f32.mrf.mxu3 }
 0x3cb   :  { %v2372_v22 = vadd.f32 %v4882_v29, %v2371_v26  ;;  %v2548_v61 = vpack.c.b16 %v2535_v43, %v2534_v32 }
 0x3cc   :  { %v4918_v56 = vunpack.c.l.b16 %v2497_v16 }
 0x3cd   :  { %v2402_v24 = vmax.f32 %v2372_v22, 0.0  ;;  %2684 = vrot.lane.b32.xlu2 %v2548_v61, %s3904_s8  ;;  %3523 = vmatmul.msk.bf16.gmra.mxu0 %vm2559_vm10, %v2548_v61 }
 0x3ce   :  { %v2674_v60 = vpack.c.b16 %v4918_v56, %v4916_v46 }
 0x3cf   :  { %v2434_v12 = vrot.slane %v2402_v24, 1  ;;  %v2482_v39 = vpack.c.bf16 %v2402_v24, %v2402_v24 }
 0x3d1   :  { %v2466_v34 = vsel %vm203_vm0, %v2434_v12, 0.0  ;;  %v2536_v28 = vunpack.c.l.b16 %v2482_v39 }
 0x3d2   :  { %v2373_v55 = vpop.f32.mrf.mxu3  ;;  %v2498_v40 = vpack.c.bf16 %v2466_v34, %v2466_v34 }
 0x3d3   :  { %v2374_v0 = vadd.f32 %v4882_v29, %v2373_v55 }
 0x3d4   :  { %v4928_v7 = vunpack.c.l.b16 %v2498_v40 }
 0x3d5   :  { %v2403_v25 = vmax.f32 %v2374_v0, 0.0 }
 0x3d7   :  { %v2435_v20 = vrot.slane %v2403_v25, 1  ;;  %v2483_v27 = vpack.c.bf16 %v2403_v25, %v2403_v25 }
 0x3d9   :  { %v2467_v14 = vsel %vm203_vm0, %v2435_v20, 0.0  ;;  %v2537_v38 = vunpack.c.l.b16 %v2483_v27 }
 0x3da   :  { %v2499_v47 = vpack.c.bf16 %v2467_v14, %v2467_v14  ;;  %v2376_v50 = vpop.f32.mrf.mxu3 }
 0x3db   :  { %v2377_v35 = vadd.f32 %v4882_v29, %v2376_v50  ;;  %v2549_v51 = vpack.c.b16 %v2537_v38, %v2536_v28 }
 0x3dc   :  { %v4930_v49 = vunpack.c.l.b16 %v2499_v47 }
 0x3dd   :  { %v2404_v10 = vmax.f32 %v2377_v35, 0.0  ;;  %2686 = vrot.lane.b32.xlu0 %v2549_v51, %s3904_s8  ;;  %3524 = vmatmul.msk.bf16.gmra.mxu0 %vm2559_vm10, %v2549_v51 }
 0x3de   :  { %v2675_v52 = vpack.c.b16 %v4930_v49, %v4928_v7 }
 0x3df   :  { %v2436_v8 = vrot.slane %v2404_v10, 1  ;;  %v2484_v2 = vpack.c.bf16 %v2404_v10, %v2404_v10 }
 0x3e1   :  { %v2468_v42 = vsel %vm203_vm0, %v2436_v8, 0.0  ;;  %v2538_v57 = vunpack.c.l.b16 %v2484_v2 }
 0x3e2   :  { %v2378_v41 = vpop.f32.mrf.mxu3  ;;  %v2500_v4 = vpack.c.bf16 %v2468_v42, %v2468_v42 }
 0x3e3   :  { %v2379_v62 = vadd.f32 %v4882_v29, %v2378_v41 }
 0x3e4   :  { %v4940_v18 = vunpack.c.l.b16 %v2500_v4 }
 0x3e5   :  { %v2405_v3 = vmax.f32 %v2379_v62, 0.0 }
 0x3e7   :  { %v2437_v54 = vrot.slane %v2405_v3, 1  ;;  %v2485_v17 = vpack.c.bf16 %v2405_v3, %v2405_v3 }
 0x3e9   :  { %v2469_v5 = vsel %vm203_vm0, %v2437_v54, 0.0  ;;  %v2539_v36 = vunpack.c.l.b16 %v2485_v17 }
 0x3ea   :  { %v2501_v44 = vpack.c.bf16 %v2469_v5, %v2469_v5  ;;  %v2381_v53 = vpop.f32.mrf.mxu3 }
 0x3eb   :  { %v2382_v30 = vadd.f32 %v4882_v29, %v2381_v53  ;;  %v2550_v19 = vpack.c.b16 %v2539_v36, %v2538_v57 }
 0x3ec   :  { %v4942_v11 = vunpack.c.l.b16 %v2501_v44 }
 0x3ed   :  { %v2406_v1 = vmax.f32 %v2382_v30, 0.0  ;;  %2688 = vrot.lane.b32.xlu1 %v2550_v19, %s3904_s8  ;;  %3525 = vmatmul.msk.bf16.gmra.mxu0 %vm2559_vm10, %v2550_v19 }
 0x3ee   :  { %v2676_v33 = vpack.c.b16 %v4942_v11, %v4940_v18 }
 0x3ef   :  { %v2438_v58 = vrot.slane %v2406_v1, 1  ;;  %v2486_v31 = vpack.c.bf16 %v2406_v1, %v2406_v1 }
 0x3f1   :  { %v2470_v45 = vsel %vm203_vm0, %v2438_v58, 0.0  ;;  %v2540_v16 = vunpack.c.l.b16 %v2486_v31 }
 0x3f2   :  { %v2383_v21 = vpop.f32.mrf.mxu3  ;;  %v2502_v43 = vpack.c.bf16 %v2470_v45, %v2470_v45 }
 0x3f3   :  { %v2384_v15 = vadd.f32 %v4882_v29, %v2383_v21 }
 0x3f4   :  { %v4952_v0 = vunpack.c.l.b16 %v2502_v43 }
 0x3f5   :  { %v2407_v59 = vmax.f32 %v2384_v15, 0.0 }
 0x3f7   :  { %v2439_v32 = vrot.slane %v2407_v59, 1  ;;  %v2487_v48 = vpack.c.bf16 %v2407_v59, %v2407_v59 }
 0x3f9   :  { %v2471_v26 = vsel %vm203_vm0, %v2439_v32, 0.0  ;;  %v2541_v22 = vunpack.c.l.b16 %v2487_v48 }
 0x3fa   :  { %v2503_v61 = vpack.c.bf16 %v2471_v26, %v2471_v26  ;;  %v2386_v24 = vpop.f32.mrf.mxu3  ;;  %v4991_v26 = vld [vmem:[%s5122_s11] ss:$0 sm:$0xff]  ;;  %s3905_s11 = smov [#allocation5]  }
 0x3fb   :  { %v2387_v12 = vadd.f32 %v4882_v29, %v2386_v24  ;;  %v2551_v55 = vpack.c.b16 %v2541_v22, %v2540_v16  ;;  %s2934_s16 = sshll.u32 %s3905_s11, 4  ;;  %s2935_s16 = int_to_ptr.vmem [resolvable:$true] %s2934_s16 }
 0x3fc   :  { %v4954_v34 = vunpack.c.l.b16 %v2503_v61 }
 0x3fd   :  { %v2408_v39 = vmax.f32 %v2387_v12, 0.0  ;;  %2690 = vrot.lane.b32.xlu2 %v2551_v55, %s3904_s8  ;;  %3526 = vmatmul.msk.bf16.gmra.mxu0 %vm2559_vm10, %v2551_v55 }
 0x3fe   :  { %v2677_v25 = vpack.c.b16 %v4954_v34, %v4952_v0 }
 0x3ff   :  { %v2440_v20 = vrot.slane %v2408_v39, 1  ;;  %v2488_v14 = vpack.c.bf16 %v2408_v39, %v2408_v39 }
 0x401   :  { %v2472_v28 = vsel %vm203_vm0, %v2440_v20, 0.0  ;;  %v2542_v51 = vunpack.c.l.b16 %v2488_v14 }
 0x402   :  { %v2388_v27 = vpop.f32.mrf.mxu3  ;;  %v2504_v35 = vpack.c.bf16 %v2472_v28, %v2472_v28 }
 0x403   :  { %v2389_v40 = vadd.f32 %v4882_v29, %v2388_v27 }
 0x404   :  { %v4964_v3 = vunpack.c.l.b16 %v2504_v35 }
 0x405   :  { %v2409_v38 = vmax.f32 %v2389_v40, 0.0 }
 0x407   :  { %v2441_v47 = vrot.slane %v2409_v38, 1  ;;  %v2489_v50 = vpack.c.bf16 %v2409_v38, %v2409_v38 }
 0x409   :  { %v2473_v10 = vsel %vm203_vm0, %v2441_v47, 0.0  ;;  %v2543_v8 = vunpack.c.l.b16 %v2489_v50 }
 0x40a   :  { %v2505_v41 = vpack.c.bf16 %v2473_v10, %v2473_v10  ;;  %v2391_v62 = vpop.f32.mrf.mxu3 }
 0x40b   :  { %v2392_v42 = vadd.f32 %v4882_v29, %v2391_v62  ;;  %v2552_v2 = vpack.c.b16 %v2543_v8, %v2542_v51 }
 0x40c   :  { %v4966_v54 = vunpack.c.l.b16 %v2505_v41 }
 0x40d   :  { %v2410_v17 = vmax.f32 %v2392_v42, 0.0  ;;  %2692 = vrot.lane.b32.xlu0 %v2552_v2, %s3904_s8  ;;  %3527 = vmatmul.msk.bf16.gmra.mxu0 %vm2559_vm10, %v2552_v2 }
 0x40e   :  { %v2678_v4 = vpack.c.b16 %v4966_v54, %v4964_v3 }
 0x40f   :  { %v2442_v57 = vrot.slane %v2410_v17, 1  ;;  %v2490_v53 = vpack.c.bf16 %v2410_v17, %v2410_v17 }
 0x411   :  { %v2474_v44 = vsel %vm203_vm0, %v2442_v57, 0.0  ;;  %v2544_v21 = vunpack.c.l.b16 %v2490_v53 }
 0x412   :  { %v2393_v5 = vpop.f32.mrf.mxu3  ;;  %v2506_v58 = vpack.c.bf16 %v2474_v44, %v2474_v44 }
 0x413   :  { %v2394_v36 = vadd.f32 %v4882_v29, %v2393_v5 }
 0x414   :  { %v4975_v32 = vunpack.c.l.b16 %v2506_v58 }
 0x415   :  { %v2411_v30 = vmax.f32 %v2394_v36, 0.0 }
 0x417   :  { %v2443_v19 = vrot.slane %v2411_v30, 1  ;;  %v2491_v1 = vpack.c.bf16 %v2411_v30, %v2411_v30 }
 0x419   :  { %v2475_v15 = vsel %vm203_vm0, %v2443_v19, 0.0  ;;  %v2545_v45 = vunpack.c.l.b16 %v2491_v1 }
 0x41a   :  { %v2507_v31 = vpack.c.bf16 %v2475_v15, %v2475_v15 }
 0x41b   :  { %v2553_v59 = vpack.c.b16 %v2545_v45, %v2544_v21 }
 0x41c   :  { %v4977_v48 = vunpack.c.l.b16 %v2507_v31 }
 0x41d   :  { %2694 = vrot.lane.b32.xlu1 %v2553_v59, %s3904_s8  ;;  %3528 = vmatmul.msk.bf16.gmra.mxu0 %vm2559_vm10, %v2553_v59 }
 0x41e   :  { %v2679_v29 = vpack.c.b16 %v4977_v48, %v4975_v32 }
 0x41f   :  { %v2681_v43 = vpop.permute.xlu0 %2680 }
 0x420   :  { %v2698_v16 = vsel %vm2559_vm10, %v2672_v13, %v2681_v43 }
 0x421   :  { %3533 = vmatmul.msk.bf16.vlgmr.msrb.gmra.mxu1 %vm2732_vm11, %v2698_v16 }
 0x427   :  { %v2685_v27 = vpop.permute.xlu2 %2684 }
 0x428   :  { %v2704_v37 = vsel %vm2559_vm10, %v2674_v60, %v2685_v27 }
 0x42a   :  { %v2600_v22 = vpop.f32.mrf.mxu0 }
 0x42b   :  { %v2601_v61 = vadd.f32 %v4991_v26, %v2600_v22 }
 0x42d   :  { %3783 = vtanh.f32 %v2601_v61 }
 0x42f   :  { %v2683_v24 = vpop.permute.xlu1 %2682 }
 0x430   :  { %v2701_v12 = vsel %vm2559_vm10, %v2673_v9, %v2683_v24 }
 0x431   :  { %3534 = vmatmul.msk.bf16.gmra.mxu1 %vm2732_vm11, %v2701_v12 }
 0x432   :  { %v2602_v63 = vpop.f32.mrf.mxu0 }
 0x433   :  { %v3784_v23 = vpop.eup %3783  ;;  %v2603_v13 = vadd.f32 %v4991_v26, %v2602_v63 }
 0x434   :  { %2817 = vst.msk [vmem:[#allocation5] sm:$0xff] %vm2559_vm10, %v3784_v23 }
 0x435   :  { %3785 = vtanh.f32 %v2603_v13 }
 0x43a   :  { %v2605_v55 = vpop.f32.mrf.mxu0 }
 0x43b   :  { %v3786_v39 = vpop.eup %3785  ;;  %v2606_v20 = vadd.f32 %v4991_v26, %v2605_v55 }
 0x43c   :  { %2818 = vst.msk [vmem:[#allocation5 + $0x8] sm:$0xff] %vm2559_vm10, %v3786_v39 }
 0x43d   :  { %3787 = vtanh.f32 %v2606_v20 }
 0x441   :  { %3535 = vmatmul.msk.bf16.gmra.mxu1 %vm2732_vm11, %v2704_v37 }
 0x442   :  { %v2607_v6 = vpop.f32.mrf.mxu0 }
 0x443   :  { %v3788_v9 = vpop.eup %3787  ;;  %v2608_v40 = vadd.f32 %v4991_v26, %v2607_v6 }
 0x444   :  { %2819 = vst.msk [vmem:[#allocation5 + $0x10] sm:$0xff] %vm2559_vm10, %v3788_v9 }
 0x445   :  { %3789 = vtanh.f32 %v2608_v40 }
 0x44a   :  { %v2610_v28 = vpop.f32.mrf.mxu0 }
 0x44b   :  { %v3790_v14 = vpop.eup %3789  ;;  %v2611_v38 = vadd.f32 %v4991_v26, %v2610_v28 }
 0x44c   :  { %2820 = vst.msk [vmem:[#allocation5 + $0x18] sm:$0xff] %vm2559_vm10, %v3790_v14 }
 0x44d   :  { %3791 = vtanh.f32 %v2611_v38 }
 0x44f   :  { %v2687_v47 = vpop.permute.xlu0 %2686 }
 0x450   :  { %v2707_v46 = vsel %vm2559_vm10, %v2675_v52, %v2687_v47 }
 0x451   :  { %3536 = vmatmul.msk.bf16.gmra.mxu1 %vm2732_vm11, %v2707_v46 }
 0x452   :  { %v2612_v56 = vpop.f32.mrf.mxu0 }
 0x453   :  { %v3792_v60 = vpop.eup %3791  ;;  %v2613_v50 = vadd.f32 %v4991_v26, %v2612_v56 }
 0x454   :  { %2821 = vst.msk [vmem:[#allocation5 + $0x20] sm:$0xff] %vm2559_vm10, %v3792_v60 }
 0x455   :  { %3793 = vtanh.f32 %v2613_v50 }
 0x457   :  { %v2691_v17 = vpop.permute.xlu2 %2690 }
 0x458   :  { %v2713_v18 = vsel %vm2559_vm10, %v2677_v25, %v2691_v17 }
 0x45a   :  { %v2615_v35 = vpop.f32.mrf.mxu0 }
 0x45b   :  { %v3794_v51 = vpop.eup %3793  ;;  %v2616_v10 = vadd.f32 %v4991_v26, %v2615_v35 }
 0x45c   :  { %2822 = vst.msk [vmem:[#allocation5 + $0x28] sm:$0xff] %vm2559_vm10, %v3794_v51 }
 0x45d   :  { %3795 = vtanh.f32 %v2616_v10 }
 0x45f   :  { %v2689_v8 = vpop.permute.xlu1 %2688 }
 0x460   :  { %v2710_v7 = vsel %vm2559_vm10, %v2676_v33, %v2689_v8 }
 0x461   :  { %3537 = vmatmul.msk.bf16.gmra.mxu1 %vm2732_vm11, %v2710_v7 }
 0x462   :  { %v2617_v49 = vpop.f32.mrf.mxu0 }
 0x463   :  { %v3796_v52 = vpop.eup %3795  ;;  %v2618_v41 = vadd.f32 %v4991_v26, %v2617_v49 }
 0x464   :  { %2823 = vst.msk [vmem:[#allocation5 + $0x30] sm:$0xff] %vm2559_vm10, %v3796_v52 }
 0x465   :  { %3797 = vtanh.f32 %v2618_v41 }
 0x46a   :  { %v2620_v62 = vpop.f32.mrf.mxu0 }
 0x46b   :  { %v3798_v42 = vpop.eup %3797  ;;  %v2621_v2 = vadd.f32 %v4991_v26, %v2620_v62 }
 0x46c   :  { %2824 = vst.msk [vmem:[#allocation5 + $0x38] sm:$0xff] %vm2559_vm10, %v3798_v42 }
 0x46d   :  { %3799 = vtanh.f32 %v2621_v2 }
 0x471   :  { %3538 = vmatmul.msk.bf16.gmra.mxu1 %vm2732_vm11, %v2713_v18 }
 0x472   :  { %v2622_v11 = vpop.f32.mrf.mxu0 }
 0x473   :  { %v3800_v33 = vpop.eup %3799  ;;  %v2623_v57 = vadd.f32 %v4991_v26, %v2622_v11 }
 0x474   :  { %2825 = vst.msk [vmem:[#allocation5 + $0x40] sm:$0xff] %vm2559_vm10, %v3800_v33 }
 0x475   :  { %3801 = vtanh.f32 %v2623_v57 }
 0x47a   :  { %v2625_v5 = vpop.f32.mrf.mxu0 }
 0x47b   :  { %v3802_v36 = vpop.eup %3801  ;;  %v2626_v44 = vadd.f32 %v4991_v26, %v2625_v5 }
 0x47c   :  { %2826 = vst.msk [vmem:[#allocation5 + $0x48] sm:$0xff] %vm2559_vm10, %v3802_v36 }
 0x47d   :  { %3803 = vtanh.f32 %v2626_v44 }
 0x47f   :  { %v2693_v53 = vpop.permute.xlu0 %2692 }
 0x480   :  { %v2716_v0 = vsel %vm2559_vm10, %v2678_v4, %v2693_v53 }
 0x481   :  { %3539 = vmatmul.msk.bf16.gmra.mxu1 %vm2732_vm11, %v2716_v0 }
 0x482   :  { %v2627_v34 = vpop.f32.mrf.mxu0 }
 0x483   :  { %v3804_v25 = vpop.eup %3803  ;;  %v2628_v30 = vadd.f32 %v4991_v26, %v2627_v34 }
 0x484   :  { %2827 = vst.msk [vmem:[#allocation5 + $0x50] sm:$0xff] %vm2559_vm10, %v3804_v25 }
 0x485   :  { %3805 = vtanh.f32 %v2628_v30 }
 0x48a   :  { %v2630_v19 = vpop.f32.mrf.mxu0 }
 0x48b   :  { %v3806_v1 = vpop.eup %3805  ;;  %v2631_v58 = vadd.f32 %v4991_v26, %v2630_v19 }
 0x48c   :  { %2828 = vst.msk [vmem:[#allocation5 + $0x58] sm:$0xff] %vm2559_vm10, %v3806_v1 }
 0x48d   :  { %3807 = vtanh.f32 %v2631_v58 }
 0x48f   :  { %v2695_v21 = vpop.permute.xlu1 %2694 }
 0x490   :  { %v2719_v3 = vsel %vm2559_vm10, %v2679_v29, %v2695_v21 }
 0x491   :  { %3540 = vmatmul.msk.bf16.gmra.mxu1 %vm2732_vm11, %v2719_v3 }
 0x492   :  { %v2632_v54 = vpop.f32.mrf.mxu0 }
 0x493   :  { %v3808_v4 = vpop.eup %3807  ;;  %v2633_v15 = vadd.f32 %v4991_v26, %v2632_v54 }
 0x494   :  { %2829 = vst.msk [vmem:[#allocation5 + $0x60] sm:$0xff] %vm2559_vm10, %v3808_v4 }
 0x495   :  { %3809 = vtanh.f32 %v2633_v15 }
 0x49a   :  { %v2635_v45 = vpop.f32.mrf.mxu0 }
 0x49b   :  { %v3810_v31 = vpop.eup %3809  ;;  %v2636_v59 = vadd.f32 %v4991_v26, %v2635_v45 }
 0x49c   :  { %2830 = vst.msk [vmem:[#allocation5 + $0x68] sm:$0xff] %vm2559_vm10, %v3810_v31 }
 0x49d   :  { %3811 = vtanh.f32 %v2636_v59 }
 0x49e   :  { %v2761_v43 = vpop.f32.mrf.mxu1 }
 0x49f   :  { %v2762_v32 = vadd.f32 %v4991_v26, %v2761_v43 }
 0x4a1   :  { %3813 = vtanh.f32 %v2762_v32 }
 0x4a2   :  { %v2637_v48 = vpop.f32.mrf.mxu0 }
 0x4a3   :  { %v3812_v29 = vpop.eup %3811  ;;  %v2638_v16 = vadd.f32 %v4991_v26, %v2637_v48 }
 0x4a4   :  { %2831 = vst.msk [vmem:[#allocation5 + $0x70] sm:$0xff] %vm2559_vm10, %v3812_v29 }
 0x4a5   :  { %3815 = vtanh.f32 %v2638_v16 }
 0x4a6   :  { %v2763_v22 = vpop.f32.mrf.mxu1 }
 0x4a7   :  { %v3814_v61 = vpop.eup %3813  ;;  %v2764_v24 = vadd.f32 %v4991_v26, %v2763_v22 }
 0x4a8   :  { %2865 = vrot.lane.b32.xlu2 %v3814_v61, %s3904_s8 }
 0x4a9   :  { %3817 = vtanh.f32 %v2764_v24 }
 0x4ab   :  { %v3816_v12 = vpop.eup %3815 }
 0x4ac   :  { %2832 = vst.msk [vmem:[#allocation5 + $0x78] sm:$0xff] %vm2559_vm10, %v3816_v12 }
 0x4ae   :  { %v2766_v63 = vpop.f32.mrf.mxu1 }
 0x4af   :  { %v3818_v23 = vpop.eup %3817  ;;  %v2767_v13 = vadd.f32 %v4991_v26, %v2766_v63 }
 0x4b0   :  { %2867 = vrot.lane.b32.xlu0 %v3818_v23, %s3904_s8 }
 0x4b1   :  { %3819 = vtanh.f32 %v2767_v13 }
 0x4b6   :  { %v2768_v55 = vpop.f32.mrf.mxu1 }
 0x4b7   :  { %v3820_v39 = vpop.eup %3819  ;;  %v2769_v20 = vadd.f32 %v4991_v26, %v2768_v55 }
 0x4b8   :  { %2869 = vrot.lane.b32.xlu1 %v3820_v39, %s3904_s8 }
 0x4b9   :  { %3821 = vtanh.f32 %v2769_v20 }
 0x4be   :  { %v2771_v27 = vpop.f32.mrf.mxu1 }
 0x4bf   :  { %v3822_v37 = vpop.eup %3821  ;;  %v2772_v6 = vadd.f32 %v4991_v26, %v2771_v27 }
 0x4c0   :  { %2871 = vrot.lane.b32.xlu2 %v3822_v37, %s3904_s8 }
 0x4c1   :  { %3823 = vtanh.f32 %v2772_v6 }
 0x4c6   :  { %v2773_v9 = vpop.f32.mrf.mxu1 }
 0x4c7   :  { %v3824_v40 = vpop.eup %3823  ;;  %v2774_v28 = vadd.f32 %v4991_v26, %v2773_v9 }
 0x4c8   :  { %2873 = vrot.lane.b32.xlu0 %v3824_v40, %s3904_s8 }
 0x4c9   :  { %3825 = vtanh.f32 %v2774_v28 }
 0x4ce   :  { %v2776_v14 = vpop.f32.mrf.mxu1 }
 0x4cf   :  { %v3826_v38 = vpop.eup %3825  ;;  %v2777_v47 = vadd.f32 %v4991_v26, %v2776_v14 }
 0x4d0   :  { %2875 = vrot.lane.b32.xlu1 %v3826_v38, %s3904_s8 }
 0x4d1   :  { %3827 = vtanh.f32 %v2777_v47 }
 0x4d6   :  { %v2778_v46 = vpop.f32.mrf.mxu1 }
 0x4d7   :  { %v3828_v56 = vpop.eup %3827  ;;  %v2779_v60 = vadd.f32 %v4991_v26, %v2778_v46 }
 0x4d8   :  { %2877 = vrot.lane.b32.xlu2 %v3828_v56, %s3904_s8 }
 0x4d9   :  { %3829 = vtanh.f32 %v2779_v60 }
 0x4de   :  { %v2781_v50 = vpop.f32.mrf.mxu1 }
 0x4df   :  { %v3830_v35 = vpop.eup %3829  ;;  %v2782_v51 = vadd.f32 %v4991_v26, %v2781_v50 }
 0x4e0   :  { %2879 = vrot.lane.b32.xlu0 %v3830_v35, %s3904_s8 }
 0x4e1   :  { %3831 = vtanh.f32 %v2782_v51 }
 0x4e6   :  { %v2783_v10 = vpop.f32.mrf.mxu1 }
 0x4e7   :  { %v3832_v8 = vpop.eup %3831  ;;  %v2784_v7 = vadd.f32 %v4991_v26, %v2783_v10 }
 0x4e8   :  { %2881 = vrot.lane.b32.xlu1 %v3832_v8, %s3904_s8 }
 0x4e9   :  { %3833 = vtanh.f32 %v2784_v7 }
 0x4ee   :  { %v2786_v49 = vpop.f32.mrf.mxu1 }
 0x4ef   :  { %v3834_v52 = vpop.eup %3833  ;;  %v2787_v41 = vadd.f32 %v4991_v26, %v2786_v49 }
 0x4f0   :  { %2883 = vrot.lane.b32.xlu2 %v3834_v52, %s3904_s8 }
 0x4f1   :  { %3835 = vtanh.f32 %v2787_v41 }
 0x4f6   :  { %v2788_v62 = vpop.f32.mrf.mxu1 }
 0x4f7   :  { %v3836_v42 = vpop.eup %3835  ;;  %v2789_v2 = vadd.f32 %v4991_v26, %v2788_v62 }
 0x4f8   :  { %2885 = vrot.lane.b32.xlu0 %v3836_v42, %s3904_s8 }
 0x4f9   :  { %3837 = vtanh.f32 %v2789_v2 }
 0x4fe   :  { %v2791_v17 = vpop.f32.mrf.mxu1 }
 0x4ff   :  { %v3838_v18 = vpop.eup %3837  ;;  %v2792_v11 = vadd.f32 %v4991_v26, %v2791_v17 }
 0x500   :  { %2887 = vrot.lane.b32.xlu1 %v3838_v18, %s3904_s8 }
 0x501   :  { %3839 = vtanh.f32 %v2792_v11 }
 0x502   :  { %v2866_v33 = vpop.permute.xlu2 %2865 }
 0x503   :  { %2914 = vst.msk [vmem:[#allocation5] sm:$0xff] %vm2913_vm12, %v2866_v33 }
 0x506   :  { %v2793_v57 = vpop.f32.mrf.mxu1 }
 0x507   :  { %v3840_v5 = vpop.eup %3839  ;;  %v2794_v36 = vadd.f32 %v4991_v26, %v2793_v57 }
 0x508   :  { %2889 = vrot.lane.b32.xlu2 %v3840_v5, %s3904_s8 }
 0x509   :  { %3841 = vtanh.f32 %v2794_v36 }
 0x50e   :  { %v2796_v44 = vpop.f32.mrf.mxu1 }
 0x50f   :  { %v3842_v53 = vpop.eup %3841  ;;  %v2797_v0 = vadd.f32 %v4991_v26, %v2796_v44 }
 0x510   :  { %2891 = vrot.lane.b32.xlu0 %v3842_v53, %s3904_s8 }
 0x511   :  { %3843 = vtanh.f32 %v2797_v0 }
 0x516   :  { %v2798_v34 = vpop.f32.mrf.mxu1 }
 0x517   :  { %v3844_v25 = vpop.eup %3843  ;;  %v2799_v30 = vadd.f32 %v4991_v26, %v2798_v34 }
 0x518   :  { %2893 = vrot.lane.b32.xlu1 %v3844_v25, %s3904_s8 }
 0x519   :  { %3845 = vtanh.f32 %v2799_v30 }
 0x51a   :  { %v2872_v19 = vpop.permute.xlu2 %2871 }
 0x51b   :  { %2917 = vst.msk [vmem:[#allocation5 + $0x18] sm:$0xff] %vm2913_vm12, %v2872_v19 }
 0x51f   :  { %v3846_v1 = vpop.eup %3845 }
 0x520   :  { %2895 = vrot.lane.b32.xlu2 %v3846_v1, %s3904_s8 }
 0x522   :  { %v2868_v58 = vpop.permute.xlu0 %2867 }
 0x523   :  { %2915 = vst.msk [vmem:[#allocation5 + $0x8] sm:$0xff] %vm2913_vm12, %v2868_v58 }
 0x52a   :  { %v2870_v21 = vpop.permute.xlu1 %2869 }
 0x52b   :  { %2916 = vst.msk [vmem:[#allocation5 + $0x10] sm:$0xff] %vm2913_vm12, %v2870_v21 }
 0x532   :  { %v2878_v3 = vpop.permute.xlu2 %2877 }
 0x533   :  { %2920 = vst.msk [vmem:[#allocation5 + $0x30] sm:$0xff] %vm2913_vm12, %v2878_v3 }
 0x53a   :  { %v2874_v54 = vpop.permute.xlu0 %2873 }
 0x53b   :  { %2918 = vst.msk [vmem:[#allocation5 + $0x20] sm:$0xff] %vm2913_vm12, %v2874_v54 }
 0x542   :  { %v2876_v26 = vpop.permute.xlu1 %2875 }
 0x543   :  { %2919 = vst.msk [vmem:[#allocation5 + $0x28] sm:$0xff] %vm2913_vm12, %v2876_v26 }
 0x54a   :  { %v2884_v4 = vpop.permute.xlu2 %2883 }
 0x54b   :  { %2923 = vst.msk [vmem:[#allocation5 + $0x48] sm:$0xff] %vm2913_vm12, %v2884_v4 }
 0x552   :  { %v2880_v15 = vpop.permute.xlu0 %2879 }
 0x553   :  { %2921 = vst.msk [vmem:[#allocation5 + $0x38] sm:$0xff] %vm2913_vm12, %v2880_v15 }
 0x55a   :  { %v2882_v45 = vpop.permute.xlu1 %2881 }
 0x55b   :  { %2922 = vst.msk [vmem:[#allocation5 + $0x40] sm:$0xff] %vm2913_vm12, %v2882_v45 }
 0x562   :  { %v2890_v31 = vpop.permute.xlu2 %2889 }
 0x563   :  { %2926 = vst.msk [vmem:[#allocation5 + $0x60] sm:$0xff] %vm2913_vm12, %v2890_v31 }
 0x56a   :  { %v2886_v59 = vpop.permute.xlu0 %2885 }
 0x56b   :  { %2924 = vst.msk [vmem:[#allocation5 + $0x50] sm:$0xff] %vm2913_vm12, %v2886_v59 }
 0x572   :  { %v2888_v43 = vpop.permute.xlu1 %2887 }
 0x573   :  { %2925 = vst.msk [vmem:[#allocation5 + $0x58] sm:$0xff] %vm2913_vm12, %v2888_v43 }
 0x57a   :  { %v2896_v32 = vpop.permute.xlu2 %2895 }
 0x57b   :  { %2929 = vst.msk [vmem:[#allocation5 + $0x78] sm:$0xff] %vm2913_vm12, %v2896_v32 }
 0x582   :  { %v2892_v48 = vpop.permute.xlu0 %2891 }
 0x583   :  { %2927 = vst.msk [vmem:[#allocation5 + $0x68] sm:$0xff] %vm2913_vm12, %v2892_v48 }
 0x58a   :  { %v2894_v29 = vpop.permute.xlu1 %2893 }
 0x58b   :  { %2928 = vst.msk [vmem:[#allocation5 + $0x70] sm:$0xff] %vm2913_vm12, %v2894_v29 }
 0x58c   :  { %2942 = dma.vmem_to_hbm [thread:$0]  %s2935_s16, 2048, %s2937_s18, [#allocation4], %s3906_s19, %s3906_s19, %s3907_s20  }
 0x58d   :  { %3897 = dma.done.wait [#allocation4], 2048  }
 0x58e   :  { %3898 = vsyncadd [#allocation4], 4294965248 }
 0x58f   :  { %2947 = vsyncpa [#allocation3], 1 }
 0x590   :  { %2948 = vsyncpa [#allocation4], 1 }

</bundles_post_ra>
